<compile_context>
chip_gen: v5e
topology: v5e:2x2
jax: 0.10.0
libtpu: 0.0.40
codegen_flags: <defaults>
</compile_context>

<pallas_src>
import jax
import jax.numpy as jnp
from jax.experimental import pallas as pl
from jax.experimental.pallas import tpu as pltpu


# -----------------------------------------------------------------------------
# Tiling helpers
# -----------------------------------------------------------------------------
def _pick_time_chunk(T, max_tc=32, min_tc=16):
    """Pick chunk size Tc (<= max_tc) and padded length T_pad = ceil(T/Tc)*Tc,
    minimizing padding.  Avoids the Tc=1 perf cliff for prime/awkward T."""
    if T <= max_tc:
        return T, T
    best_tc, best_pad = max_tc, None
    for tc in range(max_tc, min_tc - 1, -1):
        n = -(-T // tc)
        pad = n * tc - T
        if best_pad is None or pad < best_pad:
            best_tc, best_pad = tc, pad
            if pad == 0:
                break
    n = -(-T // best_tc)
    return best_tc, n * best_tc


def _pick_batch_tile(B, max_bt=64):
    """Batch tile: multiple of 8 (sublane tiling) or the full batch."""
    if B <= max_bt:
        return B
    for bt in range(max_bt, 7, -8):
        if bt % 8 == 0 and B % bt == 0:
            return bt
    return B


def _vmem_limit_bytes(Tc, Bt, E, H4, H, O):
    bf, f4 = 2, 4
    dbl = 2  # Pallas double-buffers each input/output block
    inputs = dbl * (Tc * Bt * E * bf + E * H4 * bf + H4 * f4
                    + H * H4 * bf + H * O * bf)
    outputs = dbl * Bt * O * f4
    scratch = Tc * Bt * H4 * f4 + 2 * Bt * H * f4
    live = 6 * Bt * H4 * f4 + 8 * Bt * H * f4       # per-step intermediates
    est = inputs + outputs + scratch + live
    # never below the v6e default scoped limit, never above v7x physical VMEM
    return int(min(max(4 * est, 32 * 2**20), 64 * 2**20))


# -----------------------------------------------------------------------------
# Fused kernel: input projection + bidirectional recurrence + per-direction FC.
#   grid = (direction, B // Bt, T_pad // Tc); h/c in VMEM scratch.
#   Gate order along 4H: [i, f, g, o] (PyTorch nn.LSTM).
# -----------------------------------------------------------------------------
def _make_lstm_kernel(T_real, T_pad):
    pad0 = T_pad - T_real          # backward dir: first pad0 flipped steps = pads
    needs_mask = pad0 > 0

    def kernel(x_ref, wih_ref, b_ref, whh_ref, wfc_ref, out_ref,
               gx_sc, h_sc, c_sc):
        d = pl.program_id(0)       # direction
        c_idx = pl.program_id(2)   # time chunk
        n_c = pl.num_programs(2)
        Tc = x_ref.shape[1]
        H = whh_ref.shape[1]

        @pl.when(c_idx == 0)
        def _():
            h_sc[...] = jnp.zeros_like(h_sc)
            c_sc[...] = jnp.zeros_like(c_sc)

        wih = wih_ref[0]           # (E, 4H)  bf16
        whh = whh_ref[0]           # (H, 4H)  bf16
        bias = b_ref[0]            # (1, 4H)  f32

        # ---- Fused input projection for the whole chunk (no HBM gx) --------
        # Independent of the h-chain; the scheduler can overlap these MXU
        # pushes with the serial recurrence below.
        for s in range(Tc):
            gx_sc[s] = (jnp.dot(x_ref[0, s], wih,
                                preferred_element_type=jnp.float32) + bias)

        # ---- Serial recurrence over this chunk (fully unrolled) ------------
        h = h_sc[...]              # (Bt, H) f32
        c = c_sc[...]              # (Bt, H) f32
        for s in range(Tc):
            gates = gx_sc[s] + jnp.dot(h.astype(jnp.bfloat16), whh,
                                       preferred_element_type=jnp.float32)
            # TODO(synk): for H not a multiple of 128, pad H (or reshape gates
            # to (4, Bt, H)) so gate slices stay lane-aligned; at the module's
            # default H=128 the slices below are already exact vreg tiles.
            i = jax.nn.sigmoid(gates[:, 0 * H:1 * H])
            f = jax.nn.sigmoid(gates[:, 1 * H:2 * H])
            g = jnp.tanh(gates[:, 2 * H:3 * H])
            o = jax.nn.sigmoid(gates[:, 3 * H:4 * H])
            c_new = f * c + i * g
            h_new = o * jnp.tanh(c_new)
            if needs_mask:
                t = c_idx * Tc + s
                valid = jnp.where(d == 0, t < T_real, t >= pad0)
                c = jnp.where(valid, c_new, c)
                h = jnp.where(valid, h_new, h)
            else:
                c, h = c_new, h_new
        h_sc[...] = h
        c_sc[...] = c

        # ---- Fused final Linear: this direction's partial logits -----------
        @pl.when(c_idx == n_c - 1)
        def _():
            out_ref[0] = jnp.dot(h.astype(jnp.bfloat16), wfc_ref[0],
                                 preferred_element_type=jnp.float32
                                 ).astype(out_ref.dtype)

    return kernel


def bidir_lstm_partial_logits(x_bidir, w_ih_t, b, w_hh_t, w_fc_d, *, T_real, Tc):
    """x_bidir: (2, T_pad, B, E) bf16 (dir 1 time-reversed, pads masked in-kernel).
    Returns per-direction partial logits (2, B, O) f32."""
    _, T_pad, B, E = x_bidir.shape
    H4 = w_ih_t.shape[-1]
    H = w_hh_t.shape[1]
    O = w_fc_d.shape[-1]
    Bt = _pick_batch_tile(B)
    n_b = B // Bt
    n_c = T_pad // Tc

    return pl.pallas_call(
        _make_lstm_kernel(T_real, T_pad),
        out_shape=jax.ShapeDtypeStruct((2, B, O), jnp.float32),
        grid=(2, n_b, n_c),
        in_specs=[
            pl.BlockSpec((1, Tc, Bt, E), lambda d, bb, cc: (d, cc, bb, 0)),
            pl.BlockSpec((1, E, H4), lambda d, bb, cc: (d, 0, 0)),
            pl.BlockSpec((1, 1, H4), lambda d, bb, cc: (d, 0, 0)),
            pl.BlockSpec((1, H, H4), lambda d, bb, cc: (d, 0, 0)),
            pl.BlockSpec((1, H, O), lambda d, bb, cc: (d, 0, 0)),
        ],
        out_specs=pl.BlockSpec((1, Bt, O), lambda d, bb, cc: (d, bb, 0)),
        scratch_shapes=[
            pltpu.VMEM((Tc, Bt, H4), jnp.float32),   # per-chunk gates
            pltpu.VMEM((Bt, H), jnp.float32),        # h state
            pltpu.VMEM((Bt, H), jnp.float32),        # c state
        ],
        compiler_params=pltpu.CompilerParams(
            dimension_semantics=("parallel", "parallel", "arbitrary"),
            vmem_limit_bytes=_vmem_limit_bytes(Tc, Bt, E, H4, H, O),
        ),
    )(x_bidir, w_ih_t, b, w_hh_t, w_fc_d)


# -----------------------------------------------------------------------------
# Full forward pass (embedding gather / flip / tiny bias-add are plain-JAX glue).
# -----------------------------------------------------------------------------
def lstm_sentiment_classifier(token_ids, params):
    emb = params["embedding"][token_ids]                      # (B, T, E) gather
    x = jnp.transpose(emb, (1, 0, 2)).astype(jnp.bfloat16)    # (T, B, E)
    T = x.shape[0]
    Tc, T_pad = _pick_time_chunk(T)
    if T_pad != T:
        x = jnp.concatenate(
            [x, jnp.zeros((T_pad - T,) + x.shape[1:], x.dtype)], axis=0)
    # Backward direction consumes the time-reversed (padded) sequence; pads land
    # at its start and are skipped by the in-kernel validity mask.
    x_bidir = jnp.stack([x, jnp.flip(x, axis=0)], axis=0)     # (2, T_pad, B, E)
    part = bidir_lstm_partial_logits(
        x_bidir, params["w_ih_t"], params["b"], params["w_hh_t"],
        params["w_fc_d"], T_real=T, Tc=Tc)                    # (2, B, O)
    # dropout(p=0.3) is identity in eval/inference mode
    return part[0] + part[1] + params["b_fc"]                 # (B, O)


# -----------------------------------------------------------------------------
# Deterministic parameter init (PyTorch-like shapes; weights pre-transposed and
# stored bf16 for MXU-native matmuls, biases/embedding stay f32).
# -----------------------------------------------------------------------------
def init_params(key, vocab_size, embed_dim, hidden_dim, output_dim, padding_idx=0):
    k = jax.random.split(key, 8)
    emb = jax.random.normal(k[0], (vocab_size, embed_dim), jnp.float32)
    emb = emb.at[padding_idx].set(0.0)

    s = 1.0 / float(jnp.sqrt(hidden_dim))
    # PyTorch layout: weight_ih (4H,E), weight_hh (4H,H), biases (4H,), per dir
    w_ih = jax.random.uniform(k[1], (2, 4 * hidden_dim, embed_dim), jnp.float32, -s, s)
    w_hh = jax.random.uniform(k[2], (2, 4 * hidden_dim, hidden_dim), jnp.float32, -s, s)
    b_ih = jax.random.uniform(k[3], (2, 4 * hidden_dim), jnp.float32, -s, s)
    b_hh = jax.random.uniform(k[4], (2, 4 * hidden_dim), jnp.float32, -s, s)

    sf = 1.0 / float(jnp.sqrt(2 * hidden_dim))
    w_fc = jax.random.uniform(k[5], (output_dim, 2 * hidden_dim), jnp.float32, -sf, sf)
    b_fc = jax.random.uniform(k[6], (output_dim,), jnp.float32, -sf, sf)

    return {
        "embedding": emb,
        "w_ih_t": jnp.transpose(w_ih, (0, 2, 1)).astype(jnp.bfloat16),   # (2, E, 4H)
        "w_hh_t": jnp.transpose(w_hh, (0, 2, 1)).astype(jnp.bfloat16),   # (2, H, 4H)
        "b": (b_ih + b_hh).reshape(2, 1, 4 * hidden_dim),                # (2, 1, 4H)
        # fc weight split per direction: rows [:H] hit h_fwd, [H:] hit h_bwd
        "w_fc_d": w_fc.T.reshape(2, hidden_dim, output_dim).astype(jnp.bfloat16),
        "b_fc": b_fc.reshape(1, output_dim),                             # (1, O)
    }


# -----------------------------------------------------------------------------
# Pure-JAX reference (lax.scan) using the same bf16-operand / f32-accumulate
# precision as the kernel, for a tight correctness check.
# -----------------------------------------------------------------------------
def reference(token_ids, params, hidden_dim):
    emb = params["embedding"][token_ids].astype(jnp.float32)  # (B, T, E)
    B = emb.shape[0]
    H = hidden_dim
    xs = jnp.transpose(emb, (1, 0, 2))                        # (T, B, E)

    def run_dir(d, seq):
        wih = params["w_ih_t"][d]
        whh = params["w_hh_t"][d]
        b = params["b"][d]

        def step(carry, x):
            h, c = carry
            gates = (jnp.dot(x.astype(jnp.bfloat16), wih,
                             preferred_element_type=jnp.float32)
                     + jnp.dot(h.astype(jnp.bfloat16), whh,
                               preferred_element_type=jnp.float32)
                     + b)
            i = jax.nn.sigmoid(gates[:, :H])
            f = jax.nn.sigmoid(gates[:, H:2 * H])
            g = jnp.tanh(gates[:, 2 * H:3 * H])
            o = jax.nn.sigmoid(gates[:, 3 * H:])
            c = f * c + i * g
            h = o * jnp.tanh(c)
            return (h, c), None

        (h, _), _ = jax.lax.scan(step, (jnp.zeros((B, H), jnp.float32),
                                        jnp.zeros((B, H), jnp.float32)), seq)
        return h

    h_f = run_dir(0, xs)
    h_b = run_dir(1, xs[::-1])
    return (jnp.dot(h_f.astype(jnp.bfloat16), params["w_fc_d"][0],
                    preferred_element_type=jnp.float32)
            + jnp.dot(h_b.astype(jnp.bfloat16), params["w_fc_d"][1],
                      preferred_element_type=jnp.float32)
            + params["b_fc"])


if __name__ == "__main__":
    VOCAB, EMBED, HIDDEN, OUT = 50, 16, 32, 3
    BATCH, SEQ = 2, 8

    key = jax.random.PRNGKey(0)
    pkey, xkey, xkey2 = jax.random.split(key, 3)
    params = init_params(pkey, VOCAB, EMBED, HIDDEN, OUT, padding_idx=0)

    # Test 1: small shapes consistent with the module.
    token_ids = jax.random.randint(xkey, (BATCH, SEQ), 0, VOCAB)
    logits = jax.block_until_ready(lstm_sentiment_classifier(token_ids, params))
    ref = reference(token_ids, params, HIDDEN)
    assert logits.shape == (BATCH, OUT)
    assert jnp.allclose(logits, ref, atol=2e-3, rtol=2e-3), \
        float(jnp.max(jnp.abs(logits - ref)))

    # Test 2: prime sequence length exercises time-chunk padding + masking.
    token_ids2 = jax.random.randint(xkey2, (BATCH, 67), 0, VOCAB)
    logits2 = jax.block_until_ready(lstm_sentiment_classifier(token_ids2, params))
    ref2 = reference(token_ids2, params, HIDDEN)
    assert jnp.allclose(logits2, ref2, atol=5e-3, rtol=5e-3), \
        float(jnp.max(jnp.abs(logits2 - ref2)))

    print("KERNEL_OK")
</pallas_src>

<mosaic_0001>
module attributes {stable_mosaic.version = 11 : i64} {
  func.func @kernel(%arg0: i32, %arg1: i32, %arg2: i32, %arg3: memref<1x8x2x16xbf16, #tpu.memory_space<vmem>>, %arg4: memref<1x16x128xbf16, #tpu.memory_space<vmem>>, %arg5: memref<1x1x128xf32, #tpu.memory_space<vmem>>, %arg6: memref<1x32x128xbf16, #tpu.memory_space<vmem>>, %arg7: memref<1x32x3xbf16, #tpu.memory_space<vmem>>, %arg8: memref<1x2x3xf32, #tpu.memory_space<vmem>>, %arg9: memref<8x2x128xf32, #tpu.memory_space<vmem>>, %arg10: memref<2x32xf32, #tpu.memory_space<vmem>>, %arg11: memref<2x32xf32, #tpu.memory_space<vmem>>) attributes {dimension_semantics = [#tpu.dimension_semantics<parallel>, #tpu.dimension_semantics<parallel>, #tpu.dimension_semantics<arbitrary>], iteration_bounds = array<i64: 2, 1, 1>, scalar_prefetch = 0 : i64, scratch_operands = 3 : i64, tpu.core_type = #tpu.core_type<tc>, window_params = [{transform_indices = @transform_0, window_bounds = array<i64: 1, 8, 2, 16>}, {transform_indices = @transform_1, window_bounds = array<i64: 1, 16, 128>}, {transform_indices = @transform_2, window_bounds = array<i64: 1, 1, 128>}, {transform_indices = @transform_3, window_bounds = array<i64: 1, 32, 128>}, {transform_indices = @transform_4, window_bounds = array<i64: 1, 32, 3>}, {transform_indices = @transform_5, window_bounds = array<i64: 1, 2, 3>}]} {
    %c0_i32 = arith.constant 0 : i32
    %0 = arith.cmpi eq, %arg2, %c0_i32 : i32
    %1 = arith.extui %0 : i1 to i32
    %c0_i32_0 = arith.constant 0 : i32
    %2 = arith.cmpi ne, %1, %c0_i32_0 : i32
    scf.if %2 {
      %cst_131 = arith.constant 0.000000e+00 : f32
      %320 = vector.broadcast %cst_131 : f32 to vector<2x32xf32>
      %c0_132 = arith.constant 0 : index
      %c0_133 = arith.constant 0 : index
      %321 = vector.load %arg10[%c0_132, %c0_133] : memref<2x32xf32, #tpu.memory_space<vmem>>, vector<2x32xf32>
      tpu.vector_store %arg10[%c0_132, %c0_133], %320 {strides = array<i32>} : memref<2x32xf32, #tpu.memory_space<vmem>>, vector<2x32xf32>,
      %cst_134 = arith.constant 0.000000e+00 : f32
      %322 = vector.broadcast %cst_134 : f32 to vector<2x32xf32>
      %c0_135 = arith.constant 0 : index
      %c0_136 = arith.constant 0 : index
      %323 = vector.load %arg11[%c0_135, %c0_136] : memref<2x32xf32, #tpu.memory_space<vmem>>, vector<2x32xf32>
      tpu.vector_store %arg11[%c0_135, %c0_136], %322 {strides = array<i32>} : memref<2x32xf32, #tpu.memory_space<vmem>>, vector<2x32xf32>,
    } else {
    }
    %c0 = arith.constant 0 : index
    %c0_1 = arith.constant 0 : index
    %c0_2 = arith.constant 0 : index
    %3 = vector.load %arg4[%c0, %c0_1, %c0_2] : memref<1x16x128xbf16, #tpu.memory_space<vmem>>, vector<1x16x128xbf16>
    %4 = vector.shape_cast %3 : vector<1x16x128xbf16> to vector<16x128xbf16>
    %c0_3 = arith.constant 0 : index
    %c0_4 = arith.constant 0 : index
    %c0_5 = arith.constant 0 : index
    %5 = vector.load %arg6[%c0_3, %c0_4, %c0_5] : memref<1x32x128xbf16, #tpu.memory_space<vmem>>, vector<1x32x128xbf16>
    %6 = vector.shape_cast %5 : vector<1x32x128xbf16> to vector<32x128xbf16>
    %c0_6 = arith.constant 0 : index
    %c0_7 = arith.constant 0 : index
    %c0_8 = arith.constant 0 : index
    %7 = vector.load %arg5[%c0_6, %c0_7, %c0_8] : memref<1x1x128xf32, #tpu.memory_space<vmem>>, vector<1x1x128xf32>
    %8 = vector.shape_cast %7 : vector<1x1x128xf32> to vector<1x128xf32>
    %c0_9 = arith.constant 0 : index
    %c0_10 = arith.constant 0 : index
    %c0_11 = arith.constant 0 : index
    %c0_12 = arith.constant 0 : index
    %9 = vector.load %arg3[%c0_9, %c0_10, %c0_11, %c0_12] : memref<1x8x2x16xbf16, #tpu.memory_space<vmem>>, vector<1x1x2x16xbf16>
    %10 = vector.shape_cast %9 : vector<1x1x2x16xbf16> to vector<2x16xbf16>
    %cst = arith.constant dense<0.000000e+00> : vector<2x128xf32>
    %11 = tpu.matmul %10, %4, %cst {dimension_numbers = #tpu.dot_dimension_numbers<[1], [0], [0], [1], [0, 0, 1, 1], [], []>} : vector<2x16xbf16>, vector<16x128xbf16>, vector<2x128xf32> -> vector<2x128xf32>
    %12 = vector.broadcast %8 : vector<1x128xf32> to vector<2x128xf32>
    %13 = arith.addf %11, %12 : vector<2x128xf32>
    %c0_13 = arith.constant 0 : index
    %c0_14 = arith.constant 0 : index
    %c0_15 = arith.constant 0 : index
    %14 = vector.load %arg9[%c0_13, %c0_14, %c0_15] : memref<8x2x128xf32, #tpu.memory_space<vmem>>, vector<1x2x128xf32>
    %15 = vector.shape_cast %14 : vector<1x2x128xf32> to vector<2x128xf32>
    %16 = vector.shape_cast %13 : vector<2x128xf32> to vector<1x2x128xf32>
    tpu.vector_store %arg9[%c0_13, %c0_14, %c0_15], %16 {strides = array<i32>} : memref<8x2x128xf32, #tpu.memory_space<vmem>>, vector<1x2x128xf32>,
    %c0_16 = arith.constant 0 : index
    %c1 = arith.constant 1 : index
    %c0_17 = arith.constant 0 : index
    %c0_18 = arith.constant 0 : index
    %17 = vector.load %arg3[%c0_16, %c1, %c0_17, %c0_18] : memref<1x8x2x16xbf16, #tpu.memory_space<vmem>>, vector<1x1x2x16xbf16>
    %18 = vector.shape_cast %17 : vector<1x1x2x16xbf16> to vector<2x16xbf16>
    %cst_19 = arith.constant dense<0.000000e+00> : vector<2x128xf32>
    %19 = tpu.matmul %18, %4, %cst_19 {dimension_numbers = #tpu.dot_dimension_numbers<[1], [0], [0], [1], [0, 0, 1, 1], [], []>} : vector<2x16xbf16>, vector<16x128xbf16>, vector<2x128xf32> -> vector<2x128xf32>
    %20 = vector.broadcast %8 : vector<1x128xf32> to vector<2x128xf32>
    %21 = arith.addf %19, %20 : vector<2x128xf32>
    %c1_20 = arith.constant 1 : index
    %c0_21 = arith.constant 0 : index
    %c0_22 = arith.constant 0 : index
    %22 = vector.load %arg9[%c1_20, %c0_21, %c0_22] : memref<8x2x128xf32, #tpu.memory_space<vmem>>, vector<1x2x128xf32>
    %23 = vector.shape_cast %22 : vector<1x2x128xf32> to vector<2x128xf32>
    %24 = vector.shape_cast %21 : vector<2x128xf32> to vector<1x2x128xf32>
    tpu.vector_store %arg9[%c1_20, %c0_21, %c0_22], %24 {strides = array<i32>} : memref<8x2x128xf32, #tpu.memory_space<vmem>>, vector<1x2x128xf32>,
    %c0_23 = arith.constant 0 : index
    %c2 = arith.constant 2 : index
    %c0_24 = arith.constant 0 : index
    %c0_25 = arith.constant 0 : index
    %25 = vector.load %arg3[%c0_23, %c2, %c0_24, %c0_25] : memref<1x8x2x16xbf16, #tpu.memory_space<vmem>>, vector<1x1x2x16xbf16>
    %26 = vector.shape_cast %25 : vector<1x1x2x16xbf16> to vector<2x16xbf16>
    %cst_26 = arith.constant dense<0.000000e+00> : vector<2x128xf32>
    %27 = tpu.matmul %26, %4, %cst_26 {dimension_numbers = #tpu.dot_dimension_numbers<[1], [0], [0], [1], [0, 0, 1, 1], [], []>} : vector<2x16xbf16>, vector<16x128xbf16>, vector<2x128xf32> -> vector<2x128xf32>
    %28 = vector.broadcast %8 : vector<1x128xf32> to vector<2x128xf32>
    %29 = arith.addf %27, %28 : vector<2x128xf32>
    %c2_27 = arith.constant 2 : index
    %c0_28 = arith.constant 0 : index
    %c0_29 = arith.constant 0 : index
    %30 = vector.load %arg9[%c2_27, %c0_28, %c0_29] : memref<8x2x128xf32, #tpu.memory_space<vmem>>, vector<1x2x128xf32>
    %31 = vector.shape_cast %30 : vector<1x2x128xf32> to vector<2x128xf32>
    %32 = vector.shape_cast %29 : vector<2x128xf32> to vector<1x2x128xf32>
    tpu.vector_store %arg9[%c2_27, %c0_28, %c0_29], %32 {strides = array<i32>} : memref<8x2x128xf32, #tpu.memory_space<vmem>>, vector<1x2x128xf32>,
    %c0_30 = arith.constant 0 : index
    %c3 = arith.constant 3 : index
    %c0_31 = arith.constant 0 : index
    %c0_32 = arith.constant 0 : index
    %33 = vector.load %arg3[%c0_30, %c3, %c0_31, %c0_32] : memref<1x8x2x16xbf16, #tpu.memory_space<vmem>>, vector<1x1x2x16xbf16>
    %34 = vector.shape_cast %33 : vector<1x1x2x16xbf16> to vector<2x16xbf16>
    %cst_33 = arith.constant dense<0.000000e+00> : vector<2x128xf32>
    %35 = tpu.matmul %34, %4, %cst_33 {dimension_numbers = #tpu.dot_dimension_numbers<[1], [0], [0], [1], [0, 0, 1, 1], [], []>} : vector<2x16xbf16>, vector<16x128xbf16>, vector<2x128xf32> -> vector<2x128xf32>
    %36 = vector.broadcast %8 : vector<1x128xf32> to vector<2x128xf32>
    %37 = arith.addf %35, %36 : vector<2x128xf32>
    %c3_34 = arith.constant 3 : index
    %c0_35 = arith.constant 0 : index
    %c0_36 = arith.constant 0 : index
    %38 = vector.load %arg9[%c3_34, %c0_35, %c0_36] : memref<8x2x128xf32, #tpu.memory_space<vmem>>, vector<1x2x128xf32>
    %39 = vector.shape_cast %38 : vector<1x2x128xf32> to vector<2x128xf32>
    %40 = vector.shape_cast %37 : vector<2x128xf32> to vector<1x2x128xf32>
    tpu.vector_store %arg9[%c3_34, %c0_35, %c0_36], %40 {strides = array<i32>} : memref<8x2x128xf32, #tpu.memory_space<vmem>>, vector<1x2x128xf32>,
    %c0_37 = arith.constant 0 : index
    %c4 = arith.constant 4 : index
    %c0_38 = arith.constant 0 : index
    %c0_39 = arith.constant 0 : index
    %41 = vector.load %arg3[%c0_37, %c4, %c0_38, %c0_39] : memref<1x8x2x16xbf16, #tpu.memory_space<vmem>>, vector<1x1x2x16xbf16>
    %42 = vector.shape_cast %41 : vector<1x1x2x16xbf16> to vector<2x16xbf16>
    %cst_40 = arith.constant dense<0.000000e+00> : vector<2x128xf32>
    %43 = tpu.matmul %42, %4, %cst_40 {dimension_numbers = #tpu.dot_dimension_numbers<[1], [0], [0], [1], [0, 0, 1, 1], [], []>} : vector<2x16xbf16>, vector<16x128xbf16>, vector<2x128xf32> -> vector<2x128xf32>
    %44 = vector.broadcast %8 : vector<1x128xf32> to vector<2x128xf32>
    %45 = arith.addf %43, %44 : vector<2x128xf32>
    %c4_41 = arith.constant 4 : index
    %c0_42 = arith.constant 0 : index
    %c0_43 = arith.constant 0 : index
    %46 = vector.load %arg9[%c4_41, %c0_42, %c0_43] : memref<8x2x128xf32, #tpu.memory_space<vmem>>, vector<1x2x128xf32>
    %47 = vector.shape_cast %46 : vector<1x2x128xf32> to vector<2x128xf32>
    %48 = vector.shape_cast %45 : vector<2x128xf32> to vector<1x2x128xf32>
    tpu.vector_store %arg9[%c4_41, %c0_42, %c0_43], %48 {strides = array<i32>} : memref<8x2x128xf32, #tpu.memory_space<vmem>>, vector<1x2x128xf32>,
    %c0_44 = arith.constant 0 : index
    %c5 = arith.constant 5 : index
    %c0_45 = arith.constant 0 : index
    %c0_46 = arith.constant 0 : index
    %49 = vector.load %arg3[%c0_44, %c5, %c0_45, %c0_46] : memref<1x8x2x16xbf16, #tpu.memory_space<vmem>>, vector<1x1x2x16xbf16>
    %50 = vector.shape_cast %49 : vector<1x1x2x16xbf16> to vector<2x16xbf16>
    %cst_47 = arith.constant dense<0.000000e+00> : vector<2x128xf32>
    %51 = tpu.matmul %50, %4, %cst_47 {dimension_numbers = #tpu.dot_dimension_numbers<[1], [0], [0], [1], [0, 0, 1, 1], [], []>} : vector<2x16xbf16>, vector<16x128xbf16>, vector<2x128xf32> -> vector<2x128xf32>
    %52 = vector.broadcast %8 : vector<1x128xf32> to vector<2x128xf32>
    %53 = arith.addf %51, %52 : vector<2x128xf32>
    %c5_48 = arith.constant 5 : index
    %c0_49 = arith.constant 0 : index
    %c0_50 = arith.constant 0 : index
    %54 = vector.load %arg9[%c5_48, %c0_49, %c0_50] : memref<8x2x128xf32, #tpu.memory_space<vmem>>, vector<1x2x128xf32>
    %55 = vector.shape_cast %54 : vector<1x2x128xf32> to vector<2x128xf32>
    %56 = vector.shape_cast %53 : vector<2x128xf32> to vector<1x2x128xf32>
    tpu.vector_store %arg9[%c5_48, %c0_49, %c0_50], %56 {strides = array<i32>} : memref<8x2x128xf32, #tpu.memory_space<vmem>>, vector<1x2x128xf32>,
    %c0_51 = arith.constant 0 : index
    %c6 = arith.constant 6 : index
    %c0_52 = arith.constant 0 : index
    %c0_53 = arith.constant 0 : index
    %57 = vector.load %arg3[%c0_51, %c6, %c0_52, %c0_53] : memref<1x8x2x16xbf16, #tpu.memory_space<vmem>>, vector<1x1x2x16xbf16>
    %58 = vector.shape_cast %57 : vector<1x1x2x16xbf16> to vector<2x16xbf16>
    %cst_54 = arith.constant dense<0.000000e+00> : vector<2x128xf32>
    %59 = tpu.matmul %58, %4, %cst_54 {dimension_numbers = #tpu.dot_dimension_numbers<[1], [0], [0], [1], [0, 0, 1, 1], [], []>} : vector<2x16xbf16>, vector<16x128xbf16>, vector<2x128xf32> -> vector<2x128xf32>
    %60 = vector.broadcast %8 : vector<1x128xf32> to vector<2x128xf32>
    %61 = arith.addf %59, %60 : vector<2x128xf32>
    %c6_55 = arith.constant 6 : index
    %c0_56 = arith.constant 0 : index
    %c0_57 = arith.constant 0 : index
    %62 = vector.load %arg9[%c6_55, %c0_56, %c0_57] : memref<8x2x128xf32, #tpu.memory_space<vmem>>, vector<1x2x128xf32>
    %63 = vector.shape_cast %62 : vector<1x2x128xf32> to vector<2x128xf32>
    %64 = vector.shape_cast %61 : vector<2x128xf32> to vector<1x2x128xf32>
    tpu.vector_store %arg9[%c6_55, %c0_56, %c0_57], %64 {strides = array<i32>} : memref<8x2x128xf32, #tpu.memory_space<vmem>>, vector<1x2x128xf32>,
    %c0_58 = arith.constant 0 : index
    %c7 = arith.constant 7 : index
    %c0_59 = arith.constant 0 : index
    %c0_60 = arith.constant 0 : index
    %65 = vector.load %arg3[%c0_58, %c7, %c0_59, %c0_60] : memref<1x8x2x16xbf16, #tpu.memory_space<vmem>>, vector<1x1x2x16xbf16>
    %66 = vector.shape_cast %65 : vector<1x1x2x16xbf16> to vector<2x16xbf16>
    %cst_61 = arith.constant dense<0.000000e+00> : vector<2x128xf32>
    %67 = tpu.matmul %66, %4, %cst_61 {dimension_numbers = #tpu.dot_dimension_numbers<[1], [0], [0], [1], [0, 0, 1, 1], [], []>} : vector<2x16xbf16>, vector<16x128xbf16>, vector<2x128xf32> -> vector<2x128xf32>
    %68 = vector.broadcast %8 : vector<1x128xf32> to vector<2x128xf32>
    %69 = arith.addf %67, %68 : vector<2x128xf32>
    %c7_62 = arith.constant 7 : index
    %c0_63 = arith.constant 0 : index
    %c0_64 = arith.constant 0 : index
    %70 = vector.load %arg9[%c7_62, %c0_63, %c0_64] : memref<8x2x128xf32, #tpu.memory_space<vmem>>, vector<1x2x128xf32>
    %71 = vector.shape_cast %70 : vector<1x2x128xf32> to vector<2x128xf32>
    %72 = vector.shape_cast %69 : vector<2x128xf32> to vector<1x2x128xf32>
    tpu.vector_store %arg9[%c7_62, %c0_63, %c0_64], %72 {strides = array<i32>} : memref<8x2x128xf32, #tpu.memory_space<vmem>>, vector<1x2x128xf32>,
    %c0_65 = arith.constant 0 : index
    %c0_66 = arith.constant 0 : index
    %73 = vector.load %arg10[%c0_65, %c0_66] : memref<2x32xf32, #tpu.memory_space<vmem>>, vector<2x32xf32>
    %c0_67 = arith.constant 0 : index
    %c0_68 = arith.constant 0 : index
    %74 = vector.load %arg11[%c0_67, %c0_68] : memref<2x32xf32, #tpu.memory_space<vmem>>, vector<2x32xf32>
    %c0_69 = arith.constant 0 : index
    %c0_70 = arith.constant 0 : index
    %c0_71 = arith.constant 0 : index
    %75 = vector.load %arg9[%c0_69, %c0_70, %c0_71] : memref<8x2x128xf32, #tpu.memory_space<vmem>>, vector<1x2x128xf32>
    %76 = vector.shape_cast %75 : vector<1x2x128xf32> to vector<2x128xf32>
    %77 = arith.truncf %73 : vector<2x32xf32> to vector<2x32xbf16>
    %cst_72 = arith.constant dense<0.000000e+00> : vector<2x128xf32>
    %78 = tpu.matmul %77, %6, %cst_72 {dimension_numbers = #tpu.dot_dimension_numbers<[1], [0], [0], [1], [0, 0, 1, 1], [], []>} : vector<2x32xbf16>, vector<32x128xbf16>, vector<2x128xf32> -> vector<2x128xf32>
    %79 = arith.addf %76, %78 : vector<2x128xf32>
    %80 = vector.extract_strided_slice %79 {offsets = [0, 0], sizes = [2, 32], strides = [1, 1]} : vector<2x128xf32> to vector<2x32xf32>
    %81 = arith.negf %80 : vector<2x32xf32>
    %82 = math.exp %81 : vector<2x32xf32>
    %cst_73 = arith.constant 1.000000e+00 : f32
    %83 = vector.broadcast %cst_73 : f32 to vector<2x32xf32>
    %84 = arith.addf %83, %82 : vector<2x32xf32>
    %85 = arith.divf %83, %84 : vector<2x32xf32>
    %86 = vector.extract_strided_slice %79 {offsets = [0, 32], sizes = [2, 32], strides = [1, 1]} : vector<2x128xf32> to vector<2x32xf32>
    %87 = arith.negf %86 : vector<2x32xf32>
    %88 = math.exp %87 : vector<2x32xf32>
    %cst_74 = arith.constant 1.000000e+00 : f32
    %89 = vector.broadcast %cst_74 : f32 to vector<2x32xf32>
    %90 = arith.addf %89, %88 : vector<2x32xf32>
    %91 = arith.divf %89, %90 : vector<2x32xf32>
    %92 = vector.extract_strided_slice %79 {offsets = [0, 64], sizes = [2, 32], strides = [1, 1]} : vector<2x128xf32> to vector<2x32xf32>
    %93 = math.tanh %92 : vector<2x32xf32>
    %94 = vector.extract_strided_slice %79 {offsets = [0, 96], sizes = [2, 32], strides = [1, 1]} : vector<2x128xf32> to vector<2x32xf32>
    %95 = arith.negf %94 : vector<2x32xf32>
    %96 = math.exp %95 : vector<2x32xf32>
    %cst_75 = arith.constant 1.000000e+00 : f32
    %97 = vector.broadcast %cst_75 : f32 to vector<2x32xf32>
    %98 = arith.addf %97, %96 : vector<2x32xf32>
    %99 = arith.divf %97, %98 : vector<2x32xf32>
    %100 = arith.mulf %91, %74 : vector<2x32xf32>
    %101 = arith.mulf %85, %93 : vector<2x32xf32>
    %102 = arith.addf %100, %101 : vector<2x32xf32>
    %103 = math.tanh %102 : vector<2x32xf32>
    %104 = arith.mulf %99, %103 : vector<2x32xf32>
    %c1_76 = arith.constant 1 : index
    %c0_77 = arith.constant 0 : index
    %c0_78 = arith.constant 0 : index
    %105 = vector.load %arg9[%c1_76, %c0_77, %c0_78] : memref<8x2x128xf32, #tpu.memory_space<vmem>>, vector<1x2x128xf32>
    %106 = vector.shape_cast %105 : vector<1x2x128xf32> to vector<2x128xf32>
    %107 = arith.truncf %104 : vector<2x32xf32> to vector<2x32xbf16>
    %cst_79 = arith.constant dense<0.000000e+00> : vector<2x128xf32>
    %108 = tpu.matmul %107, %6, %cst_79 {dimension_numbers = #tpu.dot_dimension_numbers<[1], [0], [0], [1], [0, 0, 1, 1], [], []>} : vector<2x32xbf16>, vector<32x128xbf16>, vector<2x128xf32> -> vector<2x128xf32>
    %109 = arith.addf %106, %108 : vector<2x128xf32>
    %110 = vector.extract_strided_slice %109 {offsets = [0, 0], sizes = [2, 32], strides = [1, 1]} : vector<2x128xf32> to vector<2x32xf32>
    %111 = arith.negf %110 : vector<2x32xf32>
    %112 = math.exp %111 : vector<2x32xf32>
    %cst_80 = arith.constant 1.000000e+00 : f32
    %113 = vector.broadcast %cst_80 : f32 to vector<2x32xf32>
    %114 = arith.addf %113, %112 : vector<2x32xf32>
    %115 = arith.divf %113, %114 : vector<2x32xf32>
    %116 = vector.extract_strided_slice %109 {offsets = [0, 32], sizes = [2, 32], strides = [1, 1]} : vector<2x128xf32> to vector<2x32xf32>
    %117 = arith.negf %116 : vector<2x32xf32>
    %118 = math.exp %117 : vector<2x32xf32>
    %cst_81 = arith.constant 1.000000e+00 : f32
    %119 = vector.broadcast %cst_81 : f32 to vector<2x32xf32>
    %120 = arith.addf %119, %118 : vector<2x32xf32>
    %121 = arith.divf %119, %120 : vector<2x32xf32>
    %122 = vector.extract_strided_slice %109 {offsets = [0, 64], sizes = [2, 32], strides = [1, 1]} : vector<2x128xf32> to vector<2x32xf32>
    %123 = math.tanh %122 : vector<2x32xf32>
    %124 = vector.extract_strided_slice %109 {offsets = [0, 96], sizes = [2, 32], strides = [1, 1]} : vector<2x128xf32> to vector<2x32xf32>
    %125 = arith.negf %124 : vector<2x32xf32>
    %126 = math.exp %125 : vector<2x32xf32>
    %cst_82 = arith.constant 1.000000e+00 : f32
    %127 = vector.broadcast %cst_82 : f32 to vector<2x32xf32>
    %128 = arith.addf %127, %126 : vector<2x32xf32>
    %129 = arith.divf %127, %128 : vector<2x32xf32>
    %130 = arith.mulf %121, %102 : vector<2x32xf32>
    %131 = arith.mulf %115, %123 : vector<2x32xf32>
    %132 = arith.addf %130, %131 : vector<2x32xf32>
    %133 = math.tanh %132 : vector<2x32xf32>
    %134 = arith.mulf %129, %133 : vector<2x32xf32>
    %c2_83 = arith.constant 2 : index
    %c0_84 = arith.constant 0 : index
    %c0_85 = arith.constant 0 : index
    %135 = vector.load %arg9[%c2_83, %c0_84, %c0_85] : memref<8x2x128xf32, #tpu.memory_space<vmem>>, vector<1x2x128xf32>
    %136 = vector.shape_cast %135 : vector<1x2x128xf32> to vector<2x128xf32>
    %137 = arith.truncf %134 : vector<2x32xf32> to vector<2x32xbf16>
    %cst_86 = arith.constant dense<0.000000e+00> : vector<2x128xf32>
    %138 = tpu.matmul %137, %6, %cst_86 {dimension_numbers = #tpu.dot_dimension_numbers<[1], [0], [0], [1], [0, 0, 1, 1], [], []>} : vector<2x32xbf16>, vector<32x128xbf16>, vector<2x128xf32> -> vector<2x128xf32>
    %139 = arith.addf %136, %138 : vector<2x128xf32>
    %140 = vector.extract_strided_slice %139 {offsets = [0, 0], sizes = [2, 32], strides = [1, 1]} : vector<2x128xf32> to vector<2x32xf32>
    %141 = arith.negf %140 : vector<2x32xf32>
    %142 = math.exp %141 : vector<2x32xf32>
    %cst_87 = arith.constant 1.000000e+00 : f32
    %143 = vector.broadcast %cst_87 : f32 to vector<2x32xf32>
    %144 = arith.addf %143, %142 : vector<2x32xf32>
    %145 = arith.divf %143, %144 : vector<2x32xf32>
    %146 = vector.extract_strided_slice %139 {offsets = [0, 32], sizes = [2, 32], strides = [1, 1]} : vector<2x128xf32> to vector<2x32xf32>
    %147 = arith.negf %146 : vector<2x32xf32>
    %148 = math.exp %147 : vector<2x32xf32>
    %cst_88 = arith.constant 1.000000e+00 : f32
    %149 = vector.broadcast %cst_88 : f32 to vector<2x32xf32>
    %150 = arith.addf %149, %148 : vector<2x32xf32>
    %151 = arith.divf %149, %150 : vector<2x32xf32>
    %152 = vector.extract_strided_slice %139 {offsets = [0, 64], sizes = [2, 32], strides = [1, 1]} : vector<2x128xf32> to vector<2x32xf32>
    %153 = math.tanh %152 : vector<2x32xf32>
    %154 = vector.extract_strided_slice %139 {offsets = [0, 96], sizes = [2, 32], strides = [1, 1]} : vector<2x128xf32> to vector<2x32xf32>
    %155 = arith.negf %154 : vector<2x32xf32>
    %156 = math.exp %155 : vector<2x32xf32>
    %cst_89 = arith.constant 1.000000e+00 : f32
    %157 = vector.broadcast %cst_89 : f32 to vector<2x32xf32>
    %158 = arith.addf %157, %156 : vector<2x32xf32>
    %159 = arith.divf %157, %158 : vector<2x32xf32>
    %160 = arith.mulf %151, %132 : vector<2x32xf32>
    %161 = arith.mulf %145, %153 : vector<2x32xf32>
    %162 = arith.addf %160, %161 : vector<2x32xf32>
    %163 = math.tanh %162 : vector<2x32xf32>
    %164 = arith.mulf %159, %163 : vector<2x32xf32>
    %c3_90 = arith.constant 3 : index
    %c0_91 = arith.constant 0 : index
    %c0_92 = arith.constant 0 : index
    %165 = vector.load %arg9[%c3_90, %c0_91, %c0_92] : memref<8x2x128xf32, #tpu.memory_space<vmem>>, vector<1x2x128xf32>
    %166 = vector.shape_cast %165 : vector<1x2x128xf32> to vector<2x128xf32>
    %167 = arith.truncf %164 : vector<2x32xf32> to vector<2x32xbf16>
    %cst_93 = arith.constant dense<0.000000e+00> : vector<2x128xf32>
    %168 = tpu.matmul %167, %6, %cst_93 {dimension_numbers = #tpu.dot_dimension_numbers<[1], [0], [0], [1], [0, 0, 1, 1], [], []>} : vector<2x32xbf16>, vector<32x128xbf16>, vector<2x128xf32> -> vector<2x128xf32>
    %169 = arith.addf %166, %168 : vector<2x128xf32>
    %170 = vector.extract_strided_slice %169 {offsets = [0, 0], sizes = [2, 32], strides = [1, 1]} : vector<2x128xf32> to vector<2x32xf32>
    %171 = arith.negf %170 : vector<2x32xf32>
    %172 = math.exp %171 : vector<2x32xf32>
    %cst_94 = arith.constant 1.000000e+00 : f32
    %173 = vector.broadcast %cst_94 : f32 to vector<2x32xf32>
    %174 = arith.addf %173, %172 : vector<2x32xf32>
    %175 = arith.divf %173, %174 : vector<2x32xf32>
    %176 = vector.extract_strided_slice %169 {offsets = [0, 32], sizes = [2, 32], strides = [1, 1]} : vector<2x128xf32> to vector<2x32xf32>
    %177 = arith.negf %176 : vector<2x32xf32>
    %178 = math.exp %177 : vector<2x32xf32>
    %cst_95 = arith.constant 1.000000e+00 : f32
    %179 = vector.broadcast %cst_95 : f32 to vector<2x32xf32>
    %180 = arith.addf %179, %178 : vector<2x32xf32>
    %181 = arith.divf %179, %180 : vector<2x32xf32>
    %182 = vector.extract_strided_slice %169 {offsets = [0, 64], sizes = [2, 32], strides = [1, 1]} : vector<2x128xf32> to vector<2x32xf32>
    %183 = math.tanh %182 : vector<2x32xf32>
    %184 = vector.extract_strided_slice %169 {offsets = [0, 96], sizes = [2, 32], strides = [1, 1]} : vector<2x128xf32> to vector<2x32xf32>
    %185 = arith.negf %184 : vector<2x32xf32>
    %186 = math.exp %185 : vector<2x32xf32>
    %cst_96 = arith.constant 1.000000e+00 : f32
    %187 = vector.broadcast %cst_96 : f32 to vector<2x32xf32>
    %188 = arith.addf %187, %186 : vector<2x32xf32>
    %189 = arith.divf %187, %188 : vector<2x32xf32>
    %190 = arith.mulf %181, %162 : vector<2x32xf32>
    %191 = arith.mulf %175, %183 : vector<2x32xf32>
    %192 = arith.addf %190, %191 : vector<2x32xf32>
    %193 = math.tanh %192 : vector<2x32xf32>
    %194 = arith.mulf %189, %193 : vector<2x32xf32>
    %c4_97 = arith.constant 4 : index
    %c0_98 = arith.constant 0 : index
    %c0_99 = arith.constant 0 : index
    %195 = vector.load %arg9[%c4_97, %c0_98, %c0_99] : memref<8x2x128xf32, #tpu.memory_space<vmem>>, vector<1x2x128xf32>
    %196 = vector.shape_cast %195 : vector<1x2x128xf32> to vector<2x128xf32>
    %197 = arith.truncf %194 : vector<2x32xf32> to vector<2x32xbf16>
    %cst_100 = arith.constant dense<0.000000e+00> : vector<2x128xf32>
    %198 = tpu.matmul %197, %6, %cst_100 {dimension_numbers = #tpu.dot_dimension_numbers<[1], [0], [0], [1], [0, 0, 1, 1], [], []>} : vector<2x32xbf16>, vector<32x128xbf16>, vector<2x128xf32> -> vector<2x128xf32>
    %199 = arith.addf %196, %198 : vector<2x128xf32>
    %200 = vector.extract_strided_slice %199 {offsets = [0, 0], sizes = [2, 32], strides = [1, 1]} : vector<2x128xf32> to vector<2x32xf32>
    %201 = arith.negf %200 : vector<2x32xf32>
    %202 = math.exp %201 : vector<2x32xf32>
    %cst_101 = arith.constant 1.000000e+00 : f32
    %203 = vector.broadcast %cst_101 : f32 to vector<2x32xf32>
    %204 = arith.addf %203, %202 : vector<2x32xf32>
    %205 = arith.divf %203, %204 : vector<2x32xf32>
    %206 = vector.extract_strided_slice %199 {offsets = [0, 32], sizes = [2, 32], strides = [1, 1]} : vector<2x128xf32> to vector<2x32xf32>
    %207 = arith.negf %206 : vector<2x32xf32>
    %208 = math.exp %207 : vector<2x32xf32>
    %cst_102 = arith.constant 1.000000e+00 : f32
    %209 = vector.broadcast %cst_102 : f32 to vector<2x32xf32>
    %210 = arith.addf %209, %208 : vector<2x32xf32>
    %211 = arith.divf %209, %210 : vector<2x32xf32>
    %212 = vector.extract_strided_slice %199 {offsets = [0, 64], sizes = [2, 32], strides = [1, 1]} : vector<2x128xf32> to vector<2x32xf32>
    %213 = math.tanh %212 : vector<2x32xf32>
    %214 = vector.extract_strided_slice %199 {offsets = [0, 96], sizes = [2, 32], strides = [1, 1]} : vector<2x128xf32> to vector<2x32xf32>
    %215 = arith.negf %214 : vector<2x32xf32>
    %216 = math.exp %215 : vector<2x32xf32>
    %cst_103 = arith.constant 1.000000e+00 : f32
    %217 = vector.broadcast %cst_103 : f32 to vector<2x32xf32>
    %218 = arith.addf %217, %216 : vector<2x32xf32>
    %219 = arith.divf %217, %218 : vector<2x32xf32>
    %220 = arith.mulf %211, %192 : vector<2x32xf32>
    %221 = arith.mulf %205, %213 : vector<2x32xf32>
    %222 = arith.addf %220, %221 : vector<2x32xf32>
    %223 = math.tanh %222 : vector<2x32xf32>
    %224 = arith.mulf %219, %223 : vector<2x32xf32>
    %c5_104 = arith.constant 5 : index
    %c0_105 = arith.constant 0 : index
    %c0_106 = arith.constant 0 : index
    %225 = vector.load %arg9[%c5_104, %c0_105, %c0_106] : memref<8x2x128xf32, #tpu.memory_space<vmem>>, vector<1x2x128xf32>
    %226 = vector.shape_cast %225 : vector<1x2x128xf32> to vector<2x128xf32>
    %227 = arith.truncf %224 : vector<2x32xf32> to vector<2x32xbf16>
    %cst_107 = arith.constant dense<0.000000e+00> : vector<2x128xf32>
    %228 = tpu.matmul %227, %6, %cst_107 {dimension_numbers = #tpu.dot_dimension_numbers<[1], [0], [0], [1], [0, 0, 1, 1], [], []>} : vector<2x32xbf16>, vector<32x128xbf16>, vector<2x128xf32> -> vector<2x128xf32>
    %229 = arith.addf %226, %228 : vector<2x128xf32>
    %230 = vector.extract_strided_slice %229 {offsets = [0, 0], sizes = [2, 32], strides = [1, 1]} : vector<2x128xf32> to vector<2x32xf32>
    %231 = arith.negf %230 : vector<2x32xf32>
    %232 = math.exp %231 : vector<2x32xf32>
    %cst_108 = arith.constant 1.000000e+00 : f32
    %233 = vector.broadcast %cst_108 : f32 to vector<2x32xf32>
    %234 = arith.addf %233, %232 : vector<2x32xf32>
    %235 = arith.divf %233, %234 : vector<2x32xf32>
    %236 = vector.extract_strided_slice %229 {offsets = [0, 32], sizes = [2, 32], strides = [1, 1]} : vector<2x128xf32> to vector<2x32xf32>
    %237 = arith.negf %236 : vector<2x32xf32>
    %238 = math.exp %237 : vector<2x32xf32>
    %cst_109 = arith.constant 1.000000e+00 : f32
    %239 = vector.broadcast %cst_109 : f32 to vector<2x32xf32>
    %240 = arith.addf %239, %238 : vector<2x32xf32>
    %241 = arith.divf %239, %240 : vector<2x32xf32>
    %242 = vector.extract_strided_slice %229 {offsets = [0, 64], sizes = [2, 32], strides = [1, 1]} : vector<2x128xf32> to vector<2x32xf32>
    %243 = math.tanh %242 : vector<2x32xf32>
    %244 = vector.extract_strided_slice %229 {offsets = [0, 96], sizes = [2, 32], strides = [1, 1]} : vector<2x128xf32> to vector<2x32xf32>
    %245 = arith.negf %244 : vector<2x32xf32>
    %246 = math.exp %245 : vector<2x32xf32>
    %cst_110 = arith.constant 1.000000e+00 : f32
    %247 = vector.broadcast %cst_110 : f32 to vector<2x32xf32>
    %248 = arith.addf %247, %246 : vector<2x32xf32>
    %249 = arith.divf %247, %248 : vector<2x32xf32>
    %250 = arith.mulf %241, %222 : vector<2x32xf32>
    %251 = arith.mulf %235, %243 : vector<2x32xf32>
    %252 = arith.addf %250, %251 : vector<2x32xf32>
    %253 = math.tanh %252 : vector<2x32xf32>
    %254 = arith.mulf %249, %253 : vector<2x32xf32>
    %c6_111 = arith.constant 6 : index
    %c0_112 = arith.constant 0 : index
    %c0_113 = arith.constant 0 : index
    %255 = vector.load %arg9[%c6_111, %c0_112, %c0_113] : memref<8x2x128xf32, #tpu.memory_space<vmem>>, vector<1x2x128xf32>
    %256 = vector.shape_cast %255 : vector<1x2x128xf32> to vector<2x128xf32>
    %257 = arith.truncf %254 : vector<2x32xf32> to vector<2x32xbf16>
    %cst_114 = arith.constant dense<0.000000e+00> : vector<2x128xf32>
    %258 = tpu.matmul %257, %6, %cst_114 {dimension_numbers = #tpu.dot_dimension_numbers<[1], [0], [0], [1], [0, 0, 1, 1], [], []>} : vector<2x32xbf16>, vector<32x128xbf16>, vector<2x128xf32> -> vector<2x128xf32>
    %259 = arith.addf %256, %258 : vector<2x128xf32>
    %260 = vector.extract_strided_slice %259 {offsets = [0, 0], sizes = [2, 32], strides = [1, 1]} : vector<2x128xf32> to vector<2x32xf32>
    %261 = arith.negf %260 : vector<2x32xf32>
    %262 = math.exp %261 : vector<2x32xf32>
    %cst_115 = arith.constant 1.000000e+00 : f32
    %263 = vector.broadcast %cst_115 : f32 to vector<2x32xf32>
    %264 = arith.addf %263, %262 : vector<2x32xf32>
    %265 = arith.divf %263, %264 : vector<2x32xf32>
    %266 = vector.extract_strided_slice %259 {offsets = [0, 32], sizes = [2, 32], strides = [1, 1]} : vector<2x128xf32> to vector<2x32xf32>
    %267 = arith.negf %266 : vector<2x32xf32>
    %268 = math.exp %267 : vector<2x32xf32>
    %cst_116 = arith.constant 1.000000e+00 : f32
    %269 = vector.broadcast %cst_116 : f32 to vector<2x32xf32>
    %270 = arith.addf %269, %268 : vector<2x32xf32>
    %271 = arith.divf %269, %270 : vector<2x32xf32>
    %272 = vector.extract_strided_slice %259 {offsets = [0, 64], sizes = [2, 32], strides = [1, 1]} : vector<2x128xf32> to vector<2x32xf32>
    %273 = math.tanh %272 : vector<2x32xf32>
    %274 = vector.extract_strided_slice %259 {offsets = [0, 96], sizes = [2, 32], strides = [1, 1]} : vector<2x128xf32> to vector<2x32xf32>
    %275 = arith.negf %274 : vector<2x32xf32>
    %276 = math.exp %275 : vector<2x32xf32>
    %cst_117 = arith.constant 1.000000e+00 : f32
    %277 = vector.broadcast %cst_117 : f32 to vector<2x32xf32>
    %278 = arith.addf %277, %276 : vector<2x32xf32>
    %279 = arith.divf %277, %278 : vector<2x32xf32>
    %280 = arith.mulf %271, %252 : vector<2x32xf32>
    %281 = arith.mulf %265, %273 : vector<2x32xf32>
    %282 = arith.addf %280, %281 : vector<2x32xf32>
    %283 = math.tanh %282 : vector<2x32xf32>
    %284 = arith.mulf %279, %283 : vector<2x32xf32>
    %c7_118 = arith.constant 7 : index
    %c0_119 = arith.constant 0 : index
    %c0_120 = arith.constant 0 : index
    %285 = vector.load %arg9[%c7_118, %c0_119, %c0_120] : memref<8x2x128xf32, #tpu.memory_space<vmem>>, vector<1x2x128xf32>
    %286 = vector.shape_cast %285 : vector<1x2x128xf32> to vector<2x128xf32>
    %287 = arith.truncf %284 : vector<2x32xf32> to vector<2x32xbf16>
    %cst_121 = arith.constant dense<0.000000e+00> : vector<2x128xf32>
    %288 = tpu.matmul %287, %6, %cst_121 {dimension_numbers = #tpu.dot_dimension_numbers<[1], [0], [0], [1], [0, 0, 1, 1], [], []>} : vector<2x32xbf16>, vector<32x128xbf16>, vector<2x128xf32> -> vector<2x128xf32>
    %289 = arith.addf %286, %288 : vector<2x128xf32>
    %290 = vector.extract_strided_slice %289 {offsets = [0, 0], sizes = [2, 32], strides = [1, 1]} : vector<2x128xf32> to vector<2x32xf32>
    %291 = arith.negf %290 : vector<2x32xf32>
    %292 = math.exp %291 : vector<2x32xf32>
    %cst_122 = arith.constant 1.000000e+00 : f32
    %293 = vector.broadcast %cst_122 : f32 to vector<2x32xf32>
    %294 = arith.addf %293, %292 : vector<2x32xf32>
    %295 = arith.divf %293, %294 : vector<2x32xf32>
    %296 = vector.extract_strided_slice %289 {offsets = [0, 32], sizes = [2, 32], strides = [1, 1]} : vector<2x128xf32> to vector<2x32xf32>
    %297 = arith.negf %296 : vector<2x32xf32>
    %298 = math.exp %297 : vector<2x32xf32>
    %cst_123 = arith.constant 1.000000e+00 : f32
    %299 = vector.broadcast %cst_123 : f32 to vector<2x32xf32>
    %300 = arith.addf %299, %298 : vector<2x32xf32>
    %301 = arith.divf %299, %300 : vector<2x32xf32>
    %302 = vector.extract_strided_slice %289 {offsets = [0, 64], sizes = [2, 32], strides = [1, 1]} : vector<2x128xf32> to vector<2x32xf32>
    %303 = math.tanh %302 : vector<2x32xf32>
    %304 = vector.extract_strided_slice %289 {offsets = [0, 96], sizes = [2, 32], strides = [1, 1]} : vector<2x128xf32> to vector<2x32xf32>
    %305 = arith.negf %304 : vector<2x32xf32>
    %306 = math.exp %305 : vector<2x32xf32>
    %cst_124 = arith.constant 1.000000e+00 : f32
    %307 = vector.broadcast %cst_124 : f32 to vector<2x32xf32>
    %308 = arith.addf %307, %306 : vector<2x32xf32>
    %309 = arith.divf %307, %308 : vector<2x32xf32>
    %310 = arith.mulf %301, %282 : vector<2x32xf32>
    %311 = arith.mulf %295, %303 : vector<2x32xf32>
    %312 = arith.addf %310, %311 : vector<2x32xf32>
    %313 = math.tanh %312 : vector<2x32xf32>
    %314 = arith.mulf %309, %313 : vector<2x32xf32>
    %c0_125 = arith.constant 0 : index
    %c0_126 = arith.constant 0 : index
    %315 = vector.load %arg10[%c0_125, %c0_126] : memref<2x32xf32, #tpu.memory_space<vmem>>, vector<2x32xf32>
    tpu.vector_store %arg10[%c0_125, %c0_126], %314 {strides = array<i32>} : memref<2x32xf32, #tpu.memory_space<vmem>>, vector<2x32xf32>,
    %c0_127 = arith.constant 0 : index
    %c0_128 = arith.constant 0 : index
    %316 = vector.load %arg11[%c0_127, %c0_128] : memref<2x32xf32, #tpu.memory_space<vmem>>, vector<2x32xf32>
    tpu.vector_store %arg11[%c0_127, %c0_128], %312 {strides = array<i32>} : memref<2x32xf32, #tpu.memory_space<vmem>>, vector<2x32xf32>,
    %c0_i32_129 = arith.constant 0 : i32
    %317 = arith.cmpi eq, %arg2, %c0_i32_129 : i32
    %318 = arith.extui %317 : i1 to i32
    %c0_i32_130 = arith.constant 0 : i32
    %319 = arith.cmpi ne, %318, %c0_i32_130 : i32
    scf.if %319 {
      %320 = arith.truncf %314 : vector<2x32xf32> to vector<2x32xbf16>
      %c0_131 = arith.constant 0 : index
      %c0_132 = arith.constant 0 : index
      %c0_133 = arith.constant 0 : index
      %321 = vector.load %arg7[%c0_131, %c0_132, %c0_133] : memref<1x32x3xbf16, #tpu.memory_space<vmem>>, vector<1x32x3xbf16>
      %322 = vector.shape_cast %321 : vector<1x32x3xbf16> to vector<32x3xbf16>
      %cst_134 = arith.constant dense<0.000000e+00> : vector<2x3xf32>
      %323 = tpu.matmul %320, %322, %cst_134 {dimension_numbers = #tpu.dot_dimension_numbers<[1], [0], [0], [1], [0, 0, 1, 1], [], []>} : vector<2x32xbf16>, vector<32x3xbf16>, vector<2x3xf32> -> vector<2x3xf32>
      %c0_135 = arith.constant 0 : index
      %c0_136 = arith.constant 0 : index
      %c0_137 = arith.constant 0 : index
      %324 = vector.load %arg8[%c0_135, %c0_136, %c0_137] : memref<1x2x3xf32, #tpu.memory_space<vmem>>, vector<1x2x3xf32>
      %325 = vector.shape_cast %324 : vector<1x2x3xf32> to vector<2x3xf32>
      %326 = vector.shape_cast %323 : vector<2x3xf32> to vector<1x2x3xf32>
      tpu.vector_store %arg8[%c0_135, %c0_136, %c0_137], %326 {strides = array<i32>} : memref<1x2x3xf32, #tpu.memory_space<vmem>>, vector<1x2x3xf32>,
    } else {
    }
    return
  }
  func.func @transform_0(%arg0: i32, %arg1: i32, %arg2: i32) -> (i32, i32, i32, i32) {
    %c0_i32 = arith.constant 0 : i32
    %c0_i32_0 = arith.constant 0 : i32
    return %arg0, %arg2, %arg1, %c0_i32 : i32, i32, i32, i32
  }
  func.func @transform_1(%arg0: i32, %arg1: i32, %arg2: i32) -> (i32, i32, i32) {
    %c0_i32 = arith.constant 0 : i32
    %c0_i32_0 = arith.constant 0 : i32
    %c0_i32_1 = arith.constant 0 : i32
    return %arg0, %c0_i32, %c0_i32_0 : i32, i32, i32
  }
  func.func @transform_2(%arg0: i32, %arg1: i32, %arg2: i32) -> (i32, i32, i32) {
    %c0_i32 = arith.constant 0 : i32
    %c0_i32_0 = arith.constant 0 : i32
    %c0_i32_1 = arith.constant 0 : i32
    return %arg0, %c0_i32, %c0_i32_0 : i32, i32, i32
  }
  func.func @transform_3(%arg0: i32, %arg1: i32, %arg2: i32) -> (i32, i32, i32) {
    %c0_i32 = arith.constant 0 : i32
    %c0_i32_0 = arith.constant 0 : i32
    %c0_i32_1 = arith.constant 0 : i32
    return %arg0, %c0_i32, %c0_i32_0 : i32, i32, i32
  }
  func.func @transform_4(%arg0: i32, %arg1: i32, %arg2: i32) -> (i32, i32, i32) {
    %c0_i32 = arith.constant 0 : i32
    %c0_i32_0 = arith.constant 0 : i32
    %c0_i32_1 = arith.constant 0 : i32
    return %arg0, %c0_i32, %c0_i32_0 : i32, i32, i32
  }
  func.func @transform_5(%arg0: i32, %arg1: i32, %arg2: i32) -> (i32, i32, i32) {
    %c0_i32 = arith.constant 0 : i32
    %c0_i32_0 = arith.constant 0 : i32
    return %arg0, %arg1, %c0_i32 : i32, i32, i32
  }
}

</mosaic_0001>

<bundles_post_ra>
// kernel: tpu_custom_call.1
= control target key start
LH: loop header
LB: loop body
LE: loop exit
PB: predicated region body
PF: predicated region fallthrough
CT: control target
= control target key end

     0   :  { %s1913_s0 = inlined_call_operand.hbm [shape: bf16[2,8,2,16], index: 0, kind: input, shape index: {}]   ;;  %s1914_s1 = inlined_call_operand.hbm [shape: bf16[2,16,128], index: 1, kind: input, shape index: {}]   ;;  %s1915_s2 = inlined_call_operand.vmem [shape: f32[2,1,128], index: 2, kind: input, shape index: {}]   ;;  %s1916_s3 = inlined_call_operand.vmem [shape: bf16[2,32,128], index: 3, kind: input, shape index: {}]   ;;  %s1917_s4 = inlined_call_operand.vmem [shape: bf16[2,32,3], index: 4, kind: input, shape index: {}]   ;;  %s1918_s5 = inlined_call_operand.hbm [shape: f32[2,2,3], index: 5, kind: output, shape index: {}]  }
   0x1   :  { %1921 = sst [smem:[#allocation17_spill]] %s1913_s0 }
   0x2   :  { %10 = vsyncpa [#allocation6], 0 }
   0x3   :  { %12 = vsyncpa [#allocation6 + $0x1], 0 }
   0x4   :  { %13 = vsyncpa [#allocation9], 0 }
   0x5   :  { %15 = vsyncpa [#allocation9 + $0x1], 0 }
   0x6   :  { %16 = vsyncpa [#allocation7], 0 }
   0x7   :  { %18 = vsyncpa [#allocation7 + $0x1], 0  ;;  %s1657_s18 = smov 0   ;;  %s1659_s19 = smov 0  }
   0x8   :  { %s1661_s20 = smov 0   ;;  %s1663_s21 = smov 0  }
   0x9   :  { %s1665_s22 = smov 0   ;;  %s1667_s23 = smov 0  }
   0xa LB: > { %1922 = sst [smem:[#allocation14_spill]] %s1613_s22  ;;  %s1250_s24 = sadd.s32 4294967295, %s1617_s23   ;;  %s1617_s23 = sphi %s1667_s23, %s24_s23   ;;  %s1613_s22 = sphi %s1665_s22, %s1933_s22   ;;  %s1609_s21 = sphi %s1663_s21, %s1932_s21   ;;  %s1605_s20 = sphi %s1661_s20, %s1936_s20   ;;  %s1601_s19 = sphi %s1659_s19, %s1935_s19   ;;  %s1597_s18 = sphi %s1657_s18, %s1934_s18  }
   0xb   : > { %s1251_s25 = sadd.s32 4294967294, %s1617_s23   ;;  %s43_s26 = sadd.s32 1, %s1613_s22 }
   0xc   : > { %s54_s27 = sadd.s32 1, %s1605_s20  ;;  %p45_p0 = scmp.ge.s32.totalorder %s43_s26, 2 }
   0xd   : > { %p61_p1 = scmp.ne.s32.totalorder %s1605_s20, %s1601_s19  ;;  %p62_p2 = scmp.eq.s32.totalorder %s1617_s23, 0 }
   0xe   : > { %p67_p3 = scmp.ne.s32.totalorder %s1601_s19, %s1597_s18  ;;  %s1938_s26 = smov (%p45_p0, %s43_s26), 0 }
   0xf   : > { %1923 = sst [smem:[#allocation15_spill]] %s1938_s26  ;;  %p1698_p4 = por %p62_p2, %p61_p1 }
  0x10   : > { %p68_p5 = scmp.eq.s32.totalorder %s1250_s24, 0  ;;  %s47_s29 = ssub.s32 %s1613_s22, %s1938_s26 }
  0x11   : > { %p197_p6 = scmp.eq.s32.totalorder %s1250_s24, 1  ;;  %p52_p7 = scmp.eq.s32.totalorder %s47_s29, 0 }
  0x12   : > { %p1704_p8 = por %p68_p5, %p67_p3  ;;  %p203_p10 = scmp.eq.s32.totalorder %s1251_s25, 1 }
  0x13   : > { %p1708_p9 = por %p197_p6, %p61_p1  ;;  %p1253_p12 = scmp.ge.s32.totalorder %s1617_s23, 2 }
  0x14   : > { %s1713_s7 = scalar_select %p52_p7, %s1605_s20, %s54_s27  }
  0x15   : > { %p1715_p11 = por %p203_p10, %p67_p3  ;;  %p1348_p13 = scmp.lt.s32.totalorder %s1617_s23, 2 }
  0x16   : > { %1927 = sst [smem:[#allocation16_spill]] %s1713_s7  ;;  %s1722_s9 = sand.u32 1, %s1605_s20  }
  0x17   : > { %s1254_s10 = sshll.u32 %s1722_s9, 3  ;;  %s1255_s11 = sshll.u32 %s1613_s22, 3 }
  0x18   : > { %s1929_s0 = sld [smem:[#allocation17_spill]]  ;;  %s227_s15 = scalar_lea.vmem [#allocation5], %s1254_s10 }
  0x19   : > { %s237_s16 = sshll.u32 %s227_s15, 4  ;;  %p1731_p0 = pnand %p1348_p13, %p1698_p4  ;;  %s238_s16 = int_to_ptr.vmem [resolvable:$true] %s237_s16 }
  0x1a   : > { %p1259_p1 = scmp.ge.s32.totalorder %s1617_s23, 1  ;;  %s224_s25 = scalar_lea.sflag [#allocation6], %s1722_s9 }
  0x1b   : > { %s1619_s27 = smov 16   ;;  %s1620_s29 = smov 1  }
  0x1c   : > { %p289_p2 = scmp.lt.s32.totalorder %s1617_s23, 3  ;;  %s251_s28 = scalar_lea.vmem [#allocation8], %s1254_s10 }
  0x1d   : > { %s248_s26 = scalar_lea.sflag [#allocation9], %s1722_s9  ;;  %s1621_s22 = smov 64  }
  0x1e   : > { %s234_s14 = scalar_lea.hbm %s1929_s0, %s1255_s11  ;;  %p290_p3 = pnand %p1259_p1, %p289_p2 }
  0x1f   : > { %s235_s17 = sshll.u32 %s234_s14, 4  ;;  %s256_s14 = scalar_lea.hbm %s1914_s1, %s1255_s11  ;;  %s236_s17 = int_to_ptr.hbm [resolvable:$true] %s235_s17 }
  0x20   : > { %1340 = dma.hbm_to_vmem [thread:$0]  (!%p1731_p0), %s236_s17, 128, %s238_s16, %s224_s25, %s1619_s27, %s1619_s27, %s1620_s29  }
  0x21   : > { %s257_s15 = sshll.u32 %s256_s14, 4  ;;  %s259_s0 = sshll.u32 %s251_s28, 4  ;;  %s258_s15 = int_to_ptr.hbm [resolvable:$true] %s257_s15  ;;  %s260_s0 = int_to_ptr.vmem [resolvable:$true] %s259_s0 }
  0x22   : > { %s1622_s7 = smov 4   ;;  %293 = sbr.rel (%p290_p3) target bundleno = 4852 (0x12f4), region = 40 }
  0x23   : > { %1343 = dma.hbm_to_vmem [thread:$0]  (!%p1731_p0), %s258_s15, 128, %s260_s0, %s248_s26, %s1621_s22, %s1621_s22, %s1622_s7  }
  0x24   : > { %s1747_s16 = sand.u32 (!%p290_p3), 1, %s1601_s19  }
  0x25   : > { %s1260_s17 = sshll.u32 (!%p290_p3), %s1747_s16, 3  ;;  %s296_s11 = scalar_lea.sflag (!%p290_p3), [#allocation6], %s1747_s16 }
  0x26   : > { %s1751_s25 = scalar_lea.vmem (!%p290_p3), [#allocation5], %s1260_s17 }
  0x27   : > { %1584 = dma.done.wait (%p1704_p8), %s296_s11, 128  }
  0x28   : > { %1586 = vsyncadd (%p1704_p8), %s296_s11, 4294967168  ;;  %s306_s9 = scalar_lea.sflag [#allocation9], %s1747_s16  ;;  %s309_s0 = scalar_lea.vmem [#allocation8], %s1260_s17 }
  0x29   : > { %1588 = dma.done.wait (%p1704_p8), %s306_s9, 128  }
  0x2a   : > { %1590 = vsyncadd (%p1704_p8), %s306_s9, 4294967168  ;;  %p356_p4 = scmp.lt.s32.totalorder %s1609_s21, 1  ;;  %vm374_vm0 = vcmask 254976   ;;  %v1623_v0 = vmov 0.0   ;;  %v1326_v1 = vld [vmem:[%s309_s0] sm:$0xff]  ;;  %vm394_vm1 = vcmask 130048  }
  0x2b   : > { %375 = vst.msk [vmem:[#allocation3] sm:$0x3] %vm374_vm0, %v1623_v0  ;;  %405 = vmatpush.bf16.msra.mxu0 %v1326_v1  ;;  %v384_v2 = vld [vmem:[%s1751_s25] sm:$0x1]  ;;  %424 = vmatpush.bf16.msra.mxu1 %v1326_v1  ;;  %v1278_v5 = vld [vmem:[%s1751_s25 + $0x4] sm:$0x1] }
  0x2c   : > { %s1765_s22 = scalar_select %p356_p4, %s1609_s21, 1  ;;  %376 = vst.msk [vmem:[#allocation4] sm:$0x3] %vm374_vm0, %v1623_v0  ;;  %444 = vmatpush.bf16.msra.mxu2 %v1326_v1  ;;  %464 = vmatpush.bf16.msra.mxu3 %v1326_v1  ;;  %vm568_vm2 = vcmask 261120   ;;  %v1272_v41 = vld [vmem:[%s1751_s25 + $0x1] sm:$0x1] }
  0x2d   : > { %s1624_s12 = smov 64   ;;  %s1625_s13 = smov 32   ;;  %v1280_v42 = vld [vmem:[%s1751_s25 + $0x5] sm:$0x1] }
  0x2e   : > { %s1324_s26 = sshll.u32 %s1765_s22, 4  ;;  %s358_s29 = scalar_lea.vmem %s1915_s2, %s1765_s22  ;;  %1271 = vmatmul.msk.bf16.vlgmr.msra.gmra.mxu0 %vm394_vm1, %v384_v2  ;;  %1273 = vmatmul.msk.bf16.vlgmr.msra.gmra.mxu1 %vm394_vm1, %v1272_v41 }
  0x2f   : > { %s363_s10 = scalar_lea.vmem %s1916_s3, %s1324_s26  ;;  %484 = vmatpush.bf16.msrb.mxu0 %v1326_v1  ;;  %504 = vmatpush.bf16.msrb.mxu1 %v1326_v1  ;;  %v1791_v8 = vld [vmem:[%s358_s29] ss:$0 sm:$0xff]  ;;  %s1626_s14 = smov 96  }
  0x30   : > { %v1779_v3 = vld [vmem:[%s363_s10 + $0x8] sm:$0xff]  ;;  %524 = vmatpush.bf16.msrb.mxu2 %v1326_v1  ;;  %v1783_v4 = vld [vmem:[%s363_s10] sm:$0xff]  ;;  %544 = vmatpush.bf16.msrb.mxu3 %v1326_v1  ;;  %s368_s17 = scalar_lea.vmem %s1917_s4, %s1324_s26  ;;  %s1320_s11 = sshll.u32 %s1609_s21, 1 }
  0x31   : > { %s1104_s22 = scalar_lea.hbm %s1918_s5, %s1320_s11  ;;  %s1093_s10 = scalar_lea.sflag [#allocation7], %s1747_s16 }
  0x32   : > { %v552_v6 = vld [vmem:[#allocation3] sm:$0x3]  ;;  %s1108_s30 = sshll.u32 %s1104_s22, 4  ;;  %s1109_s30 = int_to_ptr.hbm [resolvable:$true] %s1108_s30 }
  0x33   : > { %578 = vmatpush.bf16.msra.mxu0 %v1779_v3  ;;  %v555_v7 = vpack.c.bf16 %v552_v6, %v552_v6  ;;  %v553_v20 = vld [vmem:[#allocation4] sm:$0x3]  ;;  %641 = vmatpush.bf16.msra.mxu1 %v1779_v3  ;;  %s1545_s24 = sshra.s32 %s1109_s30, 4  ;;  %s1546_s24 = int_to_ptr.hbm [resolvable:$true] %s1545_s24 }
  0x34   : > { %s1547_s27 = scalar_lea.hbm %s1546_s24, 2  ;;  %p1552_p8 = scmp.lt.s32.totalorder %s1546_s24, %s1918_s5 }
  0x35   : > { %p1548_p5 = scmp.ne.s32.totalorder %s1546_s24, %s1547_s27 }
  0x37   : > { %579 = vmatpush.bf16.msra.mxu0 %v1783_v4  ;;  %642 = vmatpush.bf16.msra.mxu1 %v1783_v4  ;;  %p1549_p6 = pnand %p1548_p5, %p1708_p9 }
  0x39   : > { %p1550_p7 = pneg %p1549_p6 }
  0x3e   : > { %1279 = vmatmul.msk.bf16.vlgmr.msrb.gmra.mxu0 %vm394_vm1, %v1278_v5  ;;  %1281 = vmatmul.msk.bf16.vlgmr.msrb.gmra.mxu1 %vm394_vm1, %v1280_v42 }
  0x3f   : > { %818 = vmatpush.bf16.msrb.mxu0 %v1779_v3  ;;  %877 = vmatpush.bf16.msrb.mxu1 %v1779_v3 }
  0x43   : > { %819 = vmatpush.bf16.msrb.mxu0 %v1783_v4  ;;  %878 = vmatpush.bf16.msrb.mxu1 %v1783_v4 }
  0x4e   : > { %1294 = vmatmul.msk.bf16.vlgmr.msra.gmra.mxu0 %vm568_vm2, %v555_v7 }
  0xab   : > { %v407_v9 = vpop.f32.mrf.mxu0  ;;  %v426_v47 = vpop.f32.mrf.mxu1 }
  0xac   : > { %v408_v10 = vadd.f32 %v1791_v8, %v407_v9  ;;  %v427_v48 = vadd.f32 %v1791_v8, %v426_v47 }
  0xae   : > { %411 = vst [vmem:[#allocation2] sm:$0x3] %v408_v10 }
  0xaf   : > { %431 = vst [vmem:[#allocation2 + $0x2] sm:$0x3] %v427_v48 }
  0xb3   : > { %v409_v11 = vpop.f32.mrf.mxu0  ;;  %v428_v49 = vpop.f32.mrf.mxu1 }
  0xb5   : > { %v554_v15 = vld [vmem:[#allocation2] sm:$0x3] }
  0xb6   : > { %v627_v53 = vld [vmem:[#allocation2 + $0x2] sm:$0x3] }
  0xbb   : > { %v486_v12 = vpop.f32.mrf.mxu0  ;;  %v506_v50 = vpop.f32.mrf.mxu1 }
  0xbc   : > { %v487_v13 = vadd.f32 %v1791_v8, %v486_v12  ;;  %v507_v51 = vadd.f32 %v1791_v8, %v506_v50 }
  0xbe   : > { %491 = vst [vmem:[#allocation2 + $0x8] sm:$0x3] %v487_v13 }
  0xbf   : > { %511 = vst [vmem:[#allocation2 + $0xa] sm:$0x3] %v507_v51 }
  0xc3   : > { %v488_v14 = vpop.f32.mrf.mxu0  ;;  %v508_v52 = vpop.f32.mrf.mxu1 }
  0xc4   : > { %v1276_v52 = vld [vmem:[%s1751_s25 + $0x3] sm:$0x1] }
  0xc5   : > { %1277 = vmatmul.msk.bf16.vlgmr.msra.gmra.mxu3 %vm394_vm1, %v1276_v52 }
  0xc6   : > { %759 = vmatpush.bf16.msra.mxu3 %v1779_v3 }
  0xca   : > { %760 = vmatpush.bf16.msra.mxu3 %v1783_v4 }
  0xcb   : > { %v581_v16 = vpop.f32.mrf.mxu0 }
  0xcc   : > { %v585_v17 = vadd.f32 %v581_v16, %v554_v15  ;;  %v1274_v16 = vld [vmem:[%s1751_s25 + $0x2] sm:$0x1] }
  0xcd   : > { %1275 = vmatmul.msk.bf16.vlgmr.msra.gmra.mxu2 %vm394_vm1, %v1274_v16 }
  0xce   : > { %1407 = vtanh.f32 %v585_v17  ;;  %v1295_v21 = vmul.f32 -1.442695, %v585_v17  ;;  %700 = vmatpush.bf16.msra.mxu2 %v1779_v3  ;;  %v1282_v17 = vld [vmem:[%s1751_s25 + $0x6] sm:$0x1] }
  0xd0   : > { %1409 = vpow2.f32 %v1295_v21 }
  0xd2   : > { %701 = vmatpush.bf16.msra.mxu2 %v1783_v4 }
  0xd3   : > { %v583_v18 = vpop.f32.mrf.mxu0 }
  0xd4   : > { %v1408_v19 = vpop.eup %1407 }
  0xd5   : > { %612 = vrot.lane.b32.xlu0 %v1408_v19, %s1624_s12 }
  0xd6   : > { %v1410_v22 = vpop.eup %1409 }
  0xd7   : > { %v589_v23 = vadd.f32 1.0, %v1410_v22 }
  0xd9   : > { %1411 = vrcp.f32 %v589_v23  ;;  %v601_v29 = vand.u32 2147483648, %v589_v23  ;;  %vm595_vm4 = vweird.f32 %v589_v23  ;;  %v599_v30 = vand.u32 2147483647, %v589_v23 }
  0xdb   : > { %v602_v32 = vor.u32 1.1754944e-38, %v601_v29  ;;  %vm600_vm6 = vcmp.eq.f32.partialorder %v599_v30, 8.507059e+37 }
  0xdd   : > { %607 = vrot.lane.b32.xlu0 %v553_v20, %s1625_s13  ;;  %1283 = vmatmul.msk.bf16.vlgmr.msrb.gmra.mxu2 %vm394_vm1, %v1282_v17 }
  0xde   : > { %936 = vmatpush.bf16.msrb.mxu2 %v1779_v3 }
  0xdf   : > { %v1412_v24 = vpop.eup %1411 }
  0xe0   : > { %v591_v25 = vmul.f32 %v1412_v24, %v589_v23  ;;  %vm596_vm3 = vweird.f32 %v1412_v24 }
  0xe1   : > { %vm597_vm5 = vmor %vm595_vm4, %vm596_vm3 }
  0xe2   : > { %v592_v26 = vsub.f32 1.0, %v591_v25  ;;  %937 = vmatpush.bf16.msrb.mxu2 %v1783_v4 }
  0xe4   : > { %v593_v27 = vmul.f32 %v1412_v24, %v592_v26 }
  0xe6   : > { %v594_v28 = vadd.f32 %v1412_v24, %v593_v27 }
  0xe8   : > { %v598_v31 = vsel %vm597_vm5, %v1412_v24, %v594_v28 }
  0xe9   : > { %v603_v34 = vsel %vm600_vm6, %v602_v32, %v598_v31 }
 0x147   : > { %v613_v33 = vpop.permute.xlu0 %612 }
 0x148   : > { %v615_v35 = vmul.f32 %v613_v33, %v603_v34 }
 0x14a   : > { %617 = vrot.lane.b32.xlu1 %v615_v35, %s1625_s13 }
 0x14f   : > { %v608_v36 = vpop.permute.xlu0 %607 }
 0x150   : > { %v610_v37 = vmul.f32 %v608_v36, %v603_v34  ;;  %v446_v22 = vpop.f32.mrf.mxu2 }
 0x151   : > { %v447_v23 = vadd.f32 %v1791_v8, %v446_v22 }
 0x153   : > { %451 = vst [vmem:[#allocation2 + $0x4] sm:$0x3] %v447_v23 }
 0x158   : > { %v448_v24 = vpop.f32.mrf.mxu2 }
 0x15a   : > { %v686_v28 = vld [vmem:[#allocation2 + $0x4] sm:$0x3] }
 0x160   : > { %v526_v25 = vpop.f32.mrf.mxu2 }
 0x161   : > { %v527_v26 = vadd.f32 %v1791_v8, %v526_v25 }
 0x163   : > { %531 = vst [vmem:[#allocation2 + $0xc] sm:$0x3] %v527_v26 }
 0x168   : > { %v528_v27 = vpop.f32.mrf.mxu2 }
 0x1bc   : > { %v618_v38 = vpop.permute.xlu1 %617 }
 0x1bd   : > { %v620_v39 = vadd.f32 %v618_v38, %v610_v37 }
 0x1bf   : > { %1413 = vtanh.f32 %v620_v39 }
 0x1c5   : > { %v1414_v40 = vpop.eup %1413 }
 0x1c6   : > { %623 = vrot.lane.b32.xlu1 %v1414_v40, %s1624_s12 }
 0x238   : > { %v624_v43 = vpop.permute.xlu1 %623 }
 0x239   : > { %v626_v44 = vmul.f32 %v624_v43, %v603_v34 }
 0x23b   : > { %v628_v45 = vpack.c.bf16 %v626_v44, %v626_v44 }
 0x23d   : > { %630 = vrot.lane.b32.xlu2 %v628_v45, %s1625_s13 }
 0x297   : > { %v631_v46 = vpop.permute.xlu2 %630 }
 0x298   : > { %1296 = vmatmul.msk.bf16.vlgmr.msra.gmra.mxu1 %vm568_vm2, %v631_v46 }
 0x315   : > { %v644_v54 = vpop.f32.mrf.mxu1 }
 0x316   : > { %v648_v55 = vadd.f32 %v644_v54, %v627_v53  ;;  %v1284_v53 = vld [vmem:[%s1751_s25 + $0x7] sm:$0x1]  ;;  %s1262_s25 = sshll.u32 %s1747_s16, 1 }
 0x317   : > { %1285 = vmatmul.msk.bf16.vlgmr.msrb.gmra.mxu3 %vm394_vm1, %v1284_v53  ;;  %s354_s26 = scalar_lea.vmem [#allocation10], %s1262_s25 }
 0x318   : > { %1415 = vtanh.f32 %v648_v55  ;;  %v1297_v58 = vmul.f32 -1.442695, %v648_v55  ;;  %995 = vmatpush.bf16.msrb.mxu3 %v1779_v3  ;;  %s1106_s7 = sshll.u32 %s354_s26, 4  ;;  %s1107_s7 = int_to_ptr.vmem [resolvable:$true] %s1106_s7 }
 0x31a   : > { %1417 = vpow2.f32 %v1297_v58 }
 0x31c   : > { %996 = vmatpush.bf16.msrb.mxu3 %v1783_v4 }
 0x31d   : > { %v646_v56 = vpop.f32.mrf.mxu1 }
 0x31e   : > { %v1416_v57 = vpop.eup %1415 }
 0x31f   : > { %671 = vrot.lane.b32.xlu2 %v1416_v57, %s1624_s12  ;;  %v466_v57 = vpop.f32.mrf.mxu3 }
 0x320   : > { %v1418_v59 = vpop.eup %1417  ;;  %v467_v58 = vadd.f32 %v1791_v8, %v466_v57 }
 0x321   : > { %v652_v60 = vadd.f32 1.0, %v1418_v59 }
 0x322   : > { %471 = vst [vmem:[#allocation2 + $0x6] sm:$0x3] %v467_v58 }
 0x323   : > { %1419 = vrcp.f32 %v652_v60  ;;  %v664_v2 = vand.u32 2147483648, %v652_v60  ;;  %vm658_vm8 = vweird.f32 %v652_v60  ;;  %v662_v5 = vand.u32 2147483647, %v652_v60 }
 0x325   : > { %v665_v7 = vor.u32 1.1754944e-38, %v664_v2  ;;  %vm663_vm10 = vcmp.eq.f32.partialorder %v662_v5, 8.507059e+37 }
 0x327   : > { %v468_v59 = vpop.f32.mrf.mxu3 }
 0x329   : > { %v1420_v61 = vpop.eup %1419 }
 0x32a   : > { %v654_v62 = vmul.f32 %v1420_v61, %v652_v60  ;;  %vm659_vm7 = vweird.f32 %v1420_v61 }
 0x32b   : > { %vm660_vm9 = vmor %vm658_vm8, %vm659_vm7 }
 0x32c   : > { %v655_v63 = vsub.f32 1.0, %v654_v62 }
 0x32e   : > { %v656_v0 = vmul.f32 %v1420_v61, %v655_v63  ;;  %v745_v63 = vld [vmem:[#allocation2 + $0x6] sm:$0x3] }
 0x330   : > { %v657_v1 = vadd.f32 %v1420_v61, %v656_v0 }
 0x332   : > { %v661_v6 = vsel %vm660_vm9, %v1420_v61, %v657_v1 }
 0x333   : > { %v666_v10 = vsel %vm663_vm10, %v665_v7, %v661_v6 }
 0x334   : > { %v669_v12 = vmul.f32 %v666_v10, %v620_v39 }
 0x379   : > { %v672_v9 = vpop.permute.xlu2 %671 }
 0x37a   : > { %v674_v11 = vmul.f32 %v672_v9, %v666_v10 }
 0x37c   : > { %676 = vrot.lane.b32.xlu0 %v674_v11, %s1625_s13 }
 0x39a   : > { %v546_v61 = vpop.f32.mrf.mxu3 }
 0x39b   : > { %v547_v62 = vadd.f32 %v1791_v8, %v546_v61 }
 0x39d   : > { %551 = vst [vmem:[#allocation2 + $0xe] sm:$0x3] %v547_v62 }
 0x3a2   : > { %v548_v3 = vpop.f32.mrf.mxu3 }
 0x3ee   : > { %v677_v13 = vpop.permute.xlu0 %676 }
 0x3ef   : > { %v679_v14 = vadd.f32 %v677_v13, %v669_v12 }
 0x3f1   : > { %1421 = vtanh.f32 %v679_v14 }
 0x3f7   : > { %v1422_v15 = vpop.eup %1421 }
 0x3f8   : > { %682 = vrot.lane.b32.xlu1 %v1422_v15, %s1624_s12 }
 0x46a   : > { %v683_v18 = vpop.permute.xlu1 %682 }
 0x46b   : > { %v685_v19 = vmul.f32 %v683_v18, %v666_v10 }
 0x46d   : > { %v687_v20 = vpack.c.bf16 %v685_v19, %v685_v19 }
 0x46f   : > { %689 = vrot.lane.b32.xlu2 %v687_v20, %s1625_s13 }
 0x4c9   : > { %v690_v21 = vpop.permute.xlu2 %689 }
 0x4ca   : > { %1298 = vmatmul.msk.bf16.vlgmr.msra.gmra.mxu2 %vm568_vm2, %v690_v21 }
 0x54d   : > { %v703_v29 = vpop.f32.mrf.mxu2 }
 0x54e   : > { %v707_v30 = vadd.f32 %v703_v29, %v686_v28  ;;  %v804_v28 = vld [vmem:[#allocation2 + $0x8] sm:$0x3] }
 0x550   : > { %1423 = vtanh.f32 %v707_v30  ;;  %v1299_v33 = vmul.f32 -1.442695, %v707_v30 }
 0x552   : > { %1425 = vpow2.f32 %v1299_v33 }
 0x555   : > { %v705_v31 = vpop.f32.mrf.mxu2 }
 0x556   : > { %v1424_v32 = vpop.eup %1423 }
 0x557   : > { %730 = vrot.lane.b32.xlu0 %v1424_v32, %s1624_s12 }
 0x558   : > { %v1426_v34 = vpop.eup %1425 }
 0x559   : > { %v711_v35 = vadd.f32 1.0, %v1426_v34 }
 0x55b   : > { %1427 = vrcp.f32 %v711_v35  ;;  %v723_v41 = vand.u32 2147483648, %v711_v35  ;;  %vm717_vm12 = vweird.f32 %v711_v35  ;;  %v721_v42 = vand.u32 2147483647, %v711_v35 }
 0x55d   : > { %v724_v44 = vor.u32 1.1754944e-38, %v723_v41  ;;  %vm722_vm14 = vcmp.eq.f32.partialorder %v721_v42, 8.507059e+37 }
 0x561   : > { %v1428_v36 = vpop.eup %1427 }
 0x562   : > { %v713_v37 = vmul.f32 %v1428_v36, %v711_v35  ;;  %vm718_vm11 = vweird.f32 %v1428_v36 }
 0x563   : > { %vm719_vm13 = vmor %vm717_vm12, %vm718_vm11 }
 0x564   : > { %v714_v38 = vsub.f32 1.0, %v713_v37 }
 0x566   : > { %v715_v39 = vmul.f32 %v1428_v36, %v714_v38 }
 0x568   : > { %v716_v40 = vadd.f32 %v1428_v36, %v715_v39 }
 0x56a   : > { %v720_v43 = vsel %vm719_vm13, %v1428_v36, %v716_v40 }
 0x56b   : > { %v725_v46 = vsel %vm722_vm14, %v724_v44, %v720_v43 }
 0x56c   : > { %v728_v48 = vmul.f32 %v725_v46, %v679_v14 }
 0x5c9   : > { %v731_v45 = vpop.permute.xlu0 %730 }
 0x5ca   : > { %v733_v47 = vmul.f32 %v731_v45, %v725_v46 }
 0x5cc   : > { %735 = vrot.lane.b32.xlu1 %v733_v47, %s1625_s13 }
 0x63e   : > { %v736_v49 = vpop.permute.xlu1 %735 }
 0x63f   : > { %v738_v50 = vadd.f32 %v736_v49, %v728_v48 }
 0x641   : > { %1429 = vtanh.f32 %v738_v50 }
 0x647   : > { %v1430_v51 = vpop.eup %1429 }
 0x648   : > { %741 = vrot.lane.b32.xlu2 %v1430_v51, %s1624_s12 }
 0x6a2   : > { %v742_v54 = vpop.permute.xlu2 %741 }
 0x6a3   : > { %v744_v55 = vmul.f32 %v742_v54, %v725_v46 }
 0x6a5   : > { %v746_v56 = vpack.c.bf16 %v744_v55, %v744_v55 }
 0x6a7   : > { %748 = vrot.lane.b32.xlu0 %v746_v56, %s1625_s13  ;;  %v863_v56 = vld [vmem:[#allocation2 + $0xa] sm:$0x3] }
 0x719   : > { %v749_v60 = vpop.permute.xlu0 %748 }
 0x71a   : > { %1300 = vmatmul.msk.bf16.vlgmr.msra.gmra.mxu3 %vm568_vm2, %v749_v60 }
 0x79d   : > { %v762_v4 = vpop.f32.mrf.mxu3 }
 0x79e   : > { %v766_v0 = vadd.f32 %v762_v4, %v745_v63 }
 0x7a0   : > { %1431 = vtanh.f32 %v766_v0  ;;  %v1301_v5 = vmul.f32 -1.442695, %v766_v0 }
 0x7a2   : > { %1433 = vpow2.f32 %v1301_v5 }
 0x7a5   : > { %v764_v1 = vpop.f32.mrf.mxu3 }
 0x7a6   : > { %v1432_v2 = vpop.eup %1431 }
 0x7a7   : > { %789 = vrot.lane.b32.xlu1 %v1432_v2, %s1624_s12 }
 0x7a8   : > { %v1434_v6 = vpop.eup %1433 }
 0x7a9   : > { %v770_v7 = vadd.f32 1.0, %v1434_v6 }
 0x7ab   : > { %1435 = vrcp.f32 %v770_v7  ;;  %v782_v13 = vand.u32 2147483648, %v770_v7  ;;  %vm776_vm1 = vweird.f32 %v770_v7  ;;  %v780_v14 = vand.u32 2147483647, %v770_v7 }
 0x7ad   : > { %v783_v16 = vor.u32 1.1754944e-38, %v782_v13  ;;  %vm781_vm4 = vcmp.eq.f32.partialorder %v780_v14, 8.507059e+37 }
 0x7b1   : > { %v1436_v9 = vpop.eup %1435 }
 0x7b2   : > { %v772_v10 = vmul.f32 %v1436_v9, %v770_v7  ;;  %vm777_vm15 = vweird.f32 %v1436_v9 }
 0x7b3   : > { %vm778_vm3 = vmor %vm776_vm1, %vm777_vm15 }
 0x7b4   : > { %v773_v11 = vsub.f32 1.0, %v772_v10 }
 0x7b6   : > { %v774_v12 = vmul.f32 %v1436_v9, %v773_v11 }
 0x7b8   : > { %v775_v8 = vadd.f32 %v1436_v9, %v774_v12 }
 0x7ba   : > { %v779_v15 = vsel %vm778_vm3, %v1436_v9, %v775_v8 }
 0x7bb   : > { %v784_v18 = vsel %vm781_vm4, %v783_v16, %v779_v15 }
 0x7bc   : > { %v787_v20 = vmul.f32 %v784_v18, %v738_v50 }
 0x819   : > { %v790_v17 = vpop.permute.xlu1 %789 }
 0x81a   : > { %v792_v19 = vmul.f32 %v790_v17, %v784_v18 }
 0x81c   : > { %794 = vrot.lane.b32.xlu2 %v792_v19, %s1625_s13 }
 0x876   : > { %v795_v21 = vpop.permute.xlu2 %794 }
 0x877   : > { %v797_v22 = vadd.f32 %v795_v21, %v787_v20  ;;  %v922_v20 = vld [vmem:[#allocation2 + $0xc] sm:$0x3] }
 0x879   : > { %1437 = vtanh.f32 %v797_v22 }
 0x87f   : > { %v1438_v23 = vpop.eup %1437 }
 0x880   : > { %800 = vrot.lane.b32.xlu0 %v1438_v23, %s1624_s12 }
 0x8f2   : > { %v801_v24 = vpop.permute.xlu0 %800 }
 0x8f3   : > { %v803_v25 = vmul.f32 %v801_v24, %v784_v18 }
 0x8f5   : > { %v805_v26 = vpack.c.bf16 %v803_v25, %v803_v25 }
 0x8f7   : > { %807 = vrot.lane.b32.xlu1 %v805_v26, %s1625_s13 }
 0x969   : > { %v808_v27 = vpop.permute.xlu1 %807 }
 0x96a   : > { %1302 = vmatmul.msk.bf16.vlgmr.msrb.gmra.mxu0 %vm568_vm2, %v808_v27 }
 0x9e7   : > { %v821_v29 = vpop.f32.mrf.mxu0 }
 0x9e8   : > { %v825_v30 = vadd.f32 %v821_v29, %v804_v28 }
 0x9ea   : > { %1439 = vtanh.f32 %v825_v30  ;;  %v1303_v33 = vmul.f32 -1.442695, %v825_v30 }
 0x9ec   : > { %1441 = vpow2.f32 %v1303_v33 }
 0x9ef   : > { %v823_v31 = vpop.f32.mrf.mxu0 }
 0x9f0   : > { %v1440_v32 = vpop.eup %1439 }
 0x9f1   : > { %848 = vrot.lane.b32.xlu2 %v1440_v32, %s1624_s12 }
 0x9f2   : > { %v1442_v34 = vpop.eup %1441 }
 0x9f3   : > { %v829_v35 = vadd.f32 1.0, %v1442_v34 }
 0x9f5   : > { %1443 = vrcp.f32 %v829_v35  ;;  %v841_v41 = vand.u32 2147483648, %v829_v35  ;;  %vm835_vm6 = vweird.f32 %v829_v35  ;;  %v839_v42 = vand.u32 2147483647, %v829_v35 }
 0x9f7   : > { %v842_v44 = vor.u32 1.1754944e-38, %v841_v41  ;;  %vm840_vm8 = vcmp.eq.f32.partialorder %v839_v42, 8.507059e+37 }
 0x9fb   : > { %v1444_v36 = vpop.eup %1443 }
 0x9fc   : > { %v831_v37 = vmul.f32 %v1444_v36, %v829_v35  ;;  %vm836_vm5 = vweird.f32 %v1444_v36 }
 0x9fd   : > { %vm837_vm7 = vmor %vm835_vm6, %vm836_vm5 }
 0x9fe   : > { %v832_v38 = vsub.f32 1.0, %v831_v37 }
 0xa00   : > { %v833_v39 = vmul.f32 %v1444_v36, %v832_v38 }
 0xa02   : > { %v834_v40 = vadd.f32 %v1444_v36, %v833_v39 }
 0xa04   : > { %v838_v43 = vsel %vm837_vm7, %v1444_v36, %v834_v40  ;;  %vm1090_vm7 = vcmask 17408  }
 0xa05   : > { %v843_v46 = vsel %vm840_vm8, %v842_v44, %v838_v43 }
 0xa06   : > { %v846_v48 = vmul.f32 %v843_v46, %v797_v22 }
 0xa4b   : > { %v849_v45 = vpop.permute.xlu2 %848 }
 0xa4c   : > { %v851_v47 = vmul.f32 %v849_v45, %v843_v46 }
 0xa4e   : > { %853 = vrot.lane.b32.xlu0 %v851_v47, %s1625_s13 }
 0xac0   : > { %v854_v49 = vpop.permute.xlu0 %853 }
 0xac1   : > { %v856_v50 = vadd.f32 %v854_v49, %v846_v48  ;;  %v981_v48 = vld [vmem:[#allocation2 + $0xe] sm:$0x3] }
 0xac3   : > { %1445 = vtanh.f32 %v856_v50 }
 0xac9   : > { %v1446_v51 = vpop.eup %1445 }
 0xaca   : > { %859 = vrot.lane.b32.xlu1 %v1446_v51, %s1624_s12 }
 0xb3c   : > { %v860_v52 = vpop.permute.xlu1 %859 }
 0xb3d   : > { %v862_v53 = vmul.f32 %v860_v52, %v843_v46 }
 0xb3f   : > { %v864_v54 = vpack.c.bf16 %v862_v53, %v862_v53 }
 0xb41   : > { %866 = vrot.lane.b32.xlu2 %v864_v54, %s1625_s13 }
 0xb9b   : > { %v867_v55 = vpop.permute.xlu2 %866 }
 0xb9c   : > { %1304 = vmatmul.msk.bf16.vlgmr.msrb.gmra.mxu1 %vm568_vm2, %v867_v55 }
 0xc19   : > { %v880_v57 = vpop.f32.mrf.mxu1 }
 0xc1a   : > { %v884_v58 = vadd.f32 %v880_v57, %v863_v56 }
 0xc1c   : > { %1447 = vtanh.f32 %v884_v58  ;;  %v1305_v61 = vmul.f32 -1.442695, %v884_v58 }
 0xc1e   : > { %1449 = vpow2.f32 %v1305_v61 }
 0xc21   : > { %v882_v59 = vpop.f32.mrf.mxu1 }
 0xc22   : > { %v1448_v60 = vpop.eup %1447 }
 0xc23   : > { %907 = vrot.lane.b32.xlu0 %v1448_v60, %s1624_s12 }
 0xc24   : > { %v1450_v62 = vpop.eup %1449 }
 0xc25   : > { %v888_v3 = vadd.f32 1.0, %v1450_v62 }
 0xc27   : > { %1451 = vrcp.f32 %v888_v3  ;;  %v900_v5 = vand.u32 2147483648, %v888_v3  ;;  %vm894_vm10 = vweird.f32 %v888_v3  ;;  %v898_v6 = vand.u32 2147483647, %v888_v3 }
 0xc29   : > { %v901_v9 = vor.u32 1.1754944e-38, %v900_v5  ;;  %vm899_vm12 = vcmp.eq.f32.partialorder %v898_v6, 8.507059e+37 }
 0xc2d   : > { %v1452_v63 = vpop.eup %1451 }
 0xc2e   : > { %v890_v4 = vmul.f32 %v1452_v63, %v888_v3  ;;  %vm895_vm9 = vweird.f32 %v1452_v63 }
 0xc2f   : > { %vm896_vm11 = vmor %vm894_vm10, %vm895_vm9 }
 0xc30   : > { %v891_v0 = vsub.f32 1.0, %v890_v4 }
 0xc32   : > { %v892_v1 = vmul.f32 %v1452_v63, %v891_v0 }
 0xc34   : > { %v893_v2 = vadd.f32 %v1452_v63, %v892_v1 }
 0xc36   : > { %v897_v7 = vsel %vm896_vm11, %v1452_v63, %v893_v2 }
 0xc37   : > { %v902_v11 = vsel %vm899_vm12, %v901_v9, %v897_v7  ;;  %v1330_v9 = vld [vmem:[%s368_s17 + $0x8] sm:$0xff] }
 0xc38   : > { %v905_v8 = vmul.f32 %v902_v11, %v856_v50  ;;  %1083 = vmatpush.bf16.msra.mxu0 %v1330_v9 }
 0xc95   : > { %v908_v10 = vpop.permute.xlu0 %907 }
 0xc96   : > { %v910_v12 = vmul.f32 %v908_v10, %v902_v11  ;;  %v1329_v10 = vld [vmem:[%s368_s17] sm:$0xff] }
 0xc97   : > { %1084 = vmatpush.bf16.msra.mxu0 %v1329_v10 }
 0xc98   : > { %912 = vrot.lane.b32.xlu1 %v910_v12, %s1625_s13 }
 0xd0a   : > { %v913_v13 = vpop.permute.xlu1 %912 }
 0xd0b   : > { %v915_v14 = vadd.f32 %v913_v13, %v905_v8 }
 0xd0d   : > { %1453 = vtanh.f32 %v915_v14 }
 0xd13   : > { %v1454_v15 = vpop.eup %1453 }
 0xd14   : > { %918 = vrot.lane.b32.xlu2 %v1454_v15, %s1624_s12 }
 0xd6e   : > { %v919_v16 = vpop.permute.xlu2 %918 }
 0xd6f   : > { %v921_v17 = vmul.f32 %v919_v16, %v902_v11 }
 0xd71   : > { %v923_v18 = vpack.c.bf16 %v921_v17, %v921_v17 }
 0xd73   : > { %925 = vrot.lane.b32.xlu0 %v923_v18, %s1625_s13 }
 0xde5   : > { %v926_v19 = vpop.permute.xlu0 %925 }
 0xde6   : > { %1306 = vmatmul.msk.bf16.vlgmr.msrb.gmra.mxu2 %vm568_vm2, %v926_v19 }
 0xe69   : > { %v939_v21 = vpop.f32.mrf.mxu2 }
 0xe6a   : > { %v943_v22 = vadd.f32 %v939_v21, %v922_v20 }
 0xe6c   : > { %1455 = vtanh.f32 %v943_v22  ;;  %v1307_v25 = vmul.f32 -1.442695, %v943_v22 }
 0xe6e   : > { %1457 = vpow2.f32 %v1307_v25 }
 0xe71   : > { %v941_v23 = vpop.f32.mrf.mxu2 }
 0xe72   : > { %v1456_v24 = vpop.eup %1455 }
 0xe73   : > { %966 = vrot.lane.b32.xlu1 %v1456_v24, %s1624_s12 }
 0xe74   : > { %v1458_v26 = vpop.eup %1457 }
 0xe75   : > { %v947_v27 = vadd.f32 1.0, %v1458_v26 }
 0xe77   : > { %1459 = vrcp.f32 %v947_v27  ;;  %v959_v33 = vand.u32 2147483648, %v947_v27  ;;  %vm953_vm14 = vweird.f32 %v947_v27  ;;  %v957_v34 = vand.u32 2147483647, %v947_v27 }
 0xe79   : > { %v960_v36 = vor.u32 1.1754944e-38, %v959_v33  ;;  %vm958_vm1 = vcmp.eq.f32.partialorder %v957_v34, 8.507059e+37 }
 0xe7d   : > { %v1460_v28 = vpop.eup %1459 }
 0xe7e   : > { %v949_v29 = vmul.f32 %v1460_v28, %v947_v27  ;;  %vm954_vm13 = vweird.f32 %v1460_v28 }
 0xe7f   : > { %vm955_vm15 = vmor %vm953_vm14, %vm954_vm13 }
 0xe80   : > { %v950_v30 = vsub.f32 1.0, %v949_v29 }
 0xe82   : > { %v951_v31 = vmul.f32 %v1460_v28, %v950_v30 }
 0xe84   : > { %v952_v32 = vadd.f32 %v1460_v28, %v951_v31 }
 0xe86   : > { %v956_v35 = vsel %vm955_vm15, %v1460_v28, %v952_v32 }
 0xe87   : > { %v961_v38 = vsel %vm958_vm1, %v960_v36, %v956_v35 }
 0xe88   : > { %v964_v40 = vmul.f32 %v961_v38, %v915_v14 }
 0xee5   : > { %v967_v37 = vpop.permute.xlu1 %966 }
 0xee6   : > { %v969_v39 = vmul.f32 %v967_v37, %v961_v38 }
 0xee8   : > { %971 = vrot.lane.b32.xlu2 %v969_v39, %s1625_s13 }
 0xf42   : > { %v972_v41 = vpop.permute.xlu2 %971 }
 0xf43   : > { %v974_v42 = vadd.f32 %v972_v41, %v964_v40 }
 0xf45   : > { %1461 = vtanh.f32 %v974_v42 }
 0xf4b   : > { %v1462_v43 = vpop.eup %1461 }
 0xf4c   : > { %977 = vrot.lane.b32.xlu0 %v1462_v43, %s1624_s12 }
 0xfbe   : > { %v978_v44 = vpop.permute.xlu0 %977 }
 0xfbf   : > { %v980_v45 = vmul.f32 %v978_v44, %v961_v38 }
 0xfc1   : > { %v982_v46 = vpack.c.bf16 %v980_v45, %v980_v45 }
 0xfc3   : > { %984 = vrot.lane.b32.xlu1 %v982_v46, %s1625_s13 }
0x1035   : > { %v985_v47 = vpop.permute.xlu1 %984 }
0x1036   : > { %1308 = vmatmul.msk.bf16.vlgmr.msrb.gmra.mxu3 %vm568_vm2, %v985_v47 }
0x10b9   : > { %v998_v49 = vpop.f32.mrf.mxu3 }
0x10ba   : > { %v1002_v50 = vadd.f32 %v998_v49, %v981_v48 }
0x10bc   : > { %1463 = vtanh.f32 %v1002_v50  ;;  %v1309_v53 = vmul.f32 -1.442695, %v1002_v50 }
0x10be   : > { %1465 = vpow2.f32 %v1309_v53 }
0x10c1   : > { %v1000_v51 = vpop.f32.mrf.mxu3 }
0x10c2   : > { %v1464_v52 = vpop.eup %1463 }
0x10c3   : > { %1025 = vrot.lane.b32.xlu2 %v1464_v52, %s1624_s12 }
0x10c4   : > { %v1466_v54 = vpop.eup %1465 }
0x10c5   : > { %v1006_v55 = vadd.f32 1.0, %v1466_v54 }
0x10c7   : > { %1467 = vrcp.f32 %v1006_v55  ;;  %v1018_v61 = vand.u32 2147483648, %v1006_v55  ;;  %vm1012_vm4 = vweird.f32 %v1006_v55  ;;  %v1016_v62 = vand.u32 2147483647, %v1006_v55 }
0x10c9   : > { %v1019_v63 = vor.u32 1.1754944e-38, %v1018_v61  ;;  %vm1017_vm6 = vcmp.eq.f32.partialorder %v1016_v62, 8.507059e+37 }
0x10cd   : > { %v1468_v56 = vpop.eup %1467 }
0x10ce   : > { %v1008_v57 = vmul.f32 %v1468_v56, %v1006_v55  ;;  %vm1013_vm3 = vweird.f32 %v1468_v56 }
0x10cf   : > { %vm1014_vm5 = vmor %vm1012_vm4, %vm1013_vm3 }
0x10d0   : > { %v1009_v58 = vsub.f32 1.0, %v1008_v57 }
0x10d2   : > { %v1010_v59 = vmul.f32 %v1468_v56, %v1009_v58 }
0x10d4   : > { %v1011_v60 = vadd.f32 %v1468_v56, %v1010_v59 }
0x10d6   : > { %v1015_v3 = vsel %vm1014_vm5, %v1468_v56, %v1011_v60 }
0x10d7   : > { %v1020_v0 = vsel %vm1017_vm6, %v1019_v63, %v1015_v3 }
0x10d8   : > { %v1023_v2 = vmul.f32 %v1020_v0, %v974_v42 }
0x111d   : > { %v1026_v4 = vpop.permute.xlu2 %1025 }
0x111e   : > { %v1028_v1 = vmul.f32 %v1026_v4, %v1020_v0 }
0x1120   : > { %1030 = vrot.lane.b32.xlu0 %v1028_v1, %s1625_s13 }
0x1192   : > { %v1031_v5 = vpop.permute.xlu0 %1030 }
0x1193   : > { %v1033_v6 = vadd.f32 %v1031_v5, %v1023_v2 }
0x1195   : > { %1469 = vtanh.f32 %v1033_v6 }
0x119b   : > { %v1470_v7 = vpop.eup %1469 }
0x119c   : > { %1036 = vrot.lane.b32.xlu1 %v1470_v7, %s1624_s12  ;;  %s1551_s12 = scalar_lea.hbm %s1918_s5, 4 }
0x119d   : > { %p1553_p10 = scmp.lt.s32.totalorder %s1551_s12, %s1547_s27 }
0x119f   : > { %p1554_p13 = por %p1553_p10, %p1552_p8 }
0x11a1   : > { %p1555_p0 = pnand %p1554_p13, %p1550_p7 }
0x11a4   : > { %1047 = vrot.lane.b32.xlu1 %v1033_v6, %s1626_s14 }
0x120e   : > { %v1037_v11 = vpop.permute.xlu1 %1036 }
0x120f   : > { %v1039_v12 = vmul.f32 %v1037_v11, %v1020_v0 }
0x1211   : > { %v1054_v8 = vpack.c.bf16 %v1039_v12, %v1039_v12  ;;  %1041 = vrot.lane.b32.xlu0 %v1039_v12, %s1625_s13 }
0x1213   : > { %1060 = vrot.lane.b32.xlu2 %v1054_v8, %s1625_s13 }
0x1216   : > { %v1048_v13 = vpop.permute.xlu1 %1047 }
0x1217   : > { %1050 = vst.msk [vmem:[#allocation4] sm:$0x3] %vm374_vm0, %v1048_v13 }
0x126d   : > { %v1061_v14 = vpop.permute.xlu2 %1060 }
0x126e   : > { %1318 = vmatmul.msk.bf16.vlgmr.msra.gmra.mxu0 %vm568_vm2, %v1061_v14 }
0x1283   : > { %v1042_v15 = vpop.permute.xlu0 %1041 }
0x1284   : > { %1045 = vst.msk [vmem:[#allocation3] sm:$0x3] %vm374_vm0, %v1042_v15 }
0x12eb   : > { %v1086_v16 = vpop.f32.mrf.mxu0 }
0x12ec   : > { %1091 = vst.msk [vmem:[%s354_s26] sm:$0x3] %vm1090_vm7, %v1086_v16 }
0x12ed   : > { %1558 = shalt.err (!%p1555_p0)
}
0x12ee   : > { %1335 = dma.vmem_to_hbm [thread:$0]  (%p1708_p9), %s1107_s7, 32, %s1109_s30, %s1093_s10  }
0x12f3   : > { %v1088_v17 = vpop.f32.mrf.mxu0 }
0x12f4 PF: > { %s1120_s16 = sand.u32 1, %s1597_s18   ;;  %p1345_p1 = pnand %p1253_p12, %p1715_p11 }
0x12f5   : > { %s1121_s15 = scalar_lea.sflag [#allocation7], %s1120_s16 }
0x12f6   : > { %p1346_p2 = pneg %p1345_p1 }
0x12f8   : > { %1592 = dma.done.wait (%p1346_p2), %s1121_s15, 32  }
0x12f9   : > { %1594 = vsyncadd (%p1346_p2), %s1121_s15, 4294967264  ;;  %s24_s23 = sadd.s32 1, %s1617_s23   ;;  %s1931_s6 = sld [smem:[#allocation16_spill]] }
0x12fa   : > { %p21_p3 = scmp.ge.s32.totalorder %s24_s23, 4   ;;  %s1932_s21 = sld [smem:[#allocation14_spill]] }
0x12fb   : > { %s1933_s22 = sld [smem:[#allocation15_spill]]  ;;  %s1934_s18 = smov %s1601_s19 }
0x12fc   : > { %s1935_s19 = smov %s1605_s20  ;;  %23 = sbr.rel (!%p21_p3) target bundleno = 10 (0xa), region = 129 }
0x12ff   : > { %s1936_s20 = smov %s1931_s6 }
0x1301   :  { %1127 = vsyncpa [#allocation6], 1 }
0x1302   :  { %1129 = vsyncpa [#allocation6 + $0x1], 1 }
0x1303   :  { %1130 = vsyncpa [#allocation9], 1 }
0x1304   :  { %1132 = vsyncpa [#allocation9 + $0x1], 1 }
0x1305   :  { %1133 = vsyncpa [#allocation7], 1 }
0x1306   :  { %1135 = vsyncpa [#allocation7 + $0x1], 1 }

</bundles_post_ra>
